<compile_context>
chip_gen: v5e
topology: v5e:2x2
jax: 0.10.0
libtpu: 0.0.40
codegen_flags: <defaults>
</compile_context>

<pallas_src>
import numpy as np
import jax
import jax.numpy as jnp
from jax.experimental import pallas as pl
from jax.experimental.pallas import tpu as pltpu

# ----------------------------- model config -----------------------------
LAYERS = [2, 32, 32, 32, 1]          # PINN-style MLP: in=(x,t), out=u
ACTIVATION = "tanh"
N_LAYERS = len(LAYERS) - 1           # number of Linear layers (4)
N_MID = N_LAYERS - 2                 # hidden Linears after the first (2)
D_IN = LAYERS[0]                     # 2
D_OUT = LAYERS[-1]                   # 1
H_PAD = 128                          # lane-aligned hidden width
N_BATCH = 1024                       # collocation points per call
TILE_N = 256                         # batch rows per grid step (multiple of 8)


def _act(h):
    # NOTE: padded-lane correctness relies on f(0) == 0, which holds for
    # identity / tanh / relu / gelu (the activations the PyTorch module allows).
    if ACTIVATION == "identity":
        return h
    if ACTIVATION == "tanh":
        return jnp.tanh(h)
    if ACTIVATION == "relu":
        return jnp.maximum(h, 0.0)
    if ACTIVATION == "gelu":
        return jax.nn.gelu(h)
    raise ValueError(ACTIVATION)


# ------------------------------ the kernel ------------------------------
def dnn_kernel(x_ref, lb_ref, scale_ref, w0_ref, b0_ref,
               wmid_ref, bmid_ref, wlast_ref, blast_ref, o_ref):
    # Input normalization on the raw (TILE_N, D_IN) tile: (x - lb) * 1/(ub-lb).
    xn = (x_ref[...] - lb_ref[...]) * scale_ref[...]          # (TILE_N, D_IN)

    # ---- First Linear (K = D_IN = 2) on the VPU: rank-1 FMAs, no MXU pad ----
    h = b0_ref[...]                                           # (1, H_PAD)
    for d in range(D_IN):                                     # unrolled, tiny
        h = h + xn[:, d:d + 1] * w0_ref[d:d + 1, :]           # (TILE_N, H_PAD)
    h = _act(h)

    # ---- Middle Linears on the MXU (weights resident in VMEM) ----
    for l in range(N_MID):                                    # unrolled
        h = (jnp.dot(h, wmid_ref[l], preferred_element_type=jnp.float32)
             + bmid_ref[l])
        h = _act(h)

    # ---- Final Linear (H_PAD -> 1): elementwise * + lane reduce (XLU) ----
    # Lane-tight (TILE_N, 1) store: no 128x-inflated output writeback.
    o_ref[...] = (jnp.sum(h * wlast_ref[...], axis=-1, keepdims=True)
                  + blast_ref[...])


# -------------------- one-time parameter packing (host) --------------------
def pack_params(weights, biases, lb, ub):
    """Pre-pad all parameters once. weights[l]: (in_l, out_l), biases[l]: (out_l,)."""
    assert D_OUT == 1  # TODO(synk): generalize final-layer reduce for D_OUT > 1
    f32 = jnp.float32

    lb_row = jnp.asarray(lb, f32).reshape(1, D_IN)
    scale_row = (1.0 / (jnp.asarray(ub, f32) - jnp.asarray(lb, f32))).reshape(1, D_IN)

    w0 = jnp.zeros((D_IN, H_PAD), f32).at[:, :LAYERS[1]].set(weights[0])
    b0 = jnp.zeros((1, H_PAD), f32).at[0, :LAYERS[1]].set(biases[0])

    wmid = jnp.zeros((N_MID, H_PAD, H_PAD), f32)
    bmid = jnp.zeros((N_MID, 1, H_PAD), f32)
    for l in range(1, N_LAYERS - 1):
        fi, fo = LAYERS[l], LAYERS[l + 1]
        wmid = wmid.at[l - 1, :fi, :fo].set(weights[l])
        bmid = bmid.at[l - 1, 0, :fo].set(biases[l])

    # Final layer stored transposed as a single (1, H_PAD) row (D_OUT == 1).
    wlast = jnp.zeros((1, H_PAD), f32).at[0, :LAYERS[-2]].set(weights[-1][:, 0])
    blast = jnp.asarray(biases[-1], f32).reshape(1, 1)

    return (lb_row, scale_row, w0, b0, wmid, bmid, wlast, blast)


# ------------------------------ the forward ------------------------------
@jax.jit
def dnn_forward(x, params):
    """x: (N, D_IN) f32; params: output of pack_params."""
    lb_row, scale_row, w0, b0, wmid, bmid, wlast, blast = params
    n = x.shape[0]
    n_pad = pl.cdiv(n, TILE_N) * TILE_N
    if n_pad != n:
        x = jnp.pad(x, ((0, n_pad - n), (0, 0)))
    grid = (n_pad // TILE_N,)

    out = pl.pallas_call(
        dnn_kernel,
        out_shape=jax.ShapeDtypeStruct((n_pad, D_OUT), jnp.float32),
        grid=grid,
        in_specs=[
            pl.BlockSpec((TILE_N, D_IN), lambda i: (i, 0)),          # x tile
            pl.BlockSpec((1, D_IN), lambda i: (0, 0)),               # lb
            pl.BlockSpec((1, D_IN), lambda i: (0, 0)),               # 1/(ub-lb)
            pl.BlockSpec((D_IN, H_PAD), lambda i: (0, 0)),           # W0
            pl.BlockSpec((1, H_PAD), lambda i: (0, 0)),              # b0
            pl.BlockSpec((N_MID, H_PAD, H_PAD), lambda i: (0, 0, 0)),# W_mid
            pl.BlockSpec((N_MID, 1, H_PAD), lambda i: (0, 0, 0)),    # b_mid
            pl.BlockSpec((1, H_PAD), lambda i: (0, 0)),              # W_last^T
            pl.BlockSpec((1, 1), lambda i: (0, 0)),                  # b_last
        ],
        out_specs=pl.BlockSpec((TILE_N, D_OUT), lambda i: (i, 0)),
        compiler_params=pltpu.CompilerParams(
            dimension_semantics=("parallel",)),
    )(x, lb_row, scale_row, w0, b0, wmid, bmid, wlast, blast)

    return out[:n]


# --------------------------- pure-JAX reference ---------------------------
def dnn_reference(x, lb, ub, weights, biases):
    h = (x - lb) / (ub - lb)
    for l in range(N_LAYERS - 1):
        h = _act(h @ weights[l] + biases[l])
    return h @ weights[N_LAYERS - 1] + biases[N_LAYERS - 1]


# ---------------------------------- main ----------------------------------
if __name__ == "__main__":
    key = jax.random.PRNGKey(0)

    # Deterministic parameter init mimicking torch.nn.Linear's default
    # uniform(-1/sqrt(fan_in), 1/sqrt(fan_in)).  Weights stored as (in, out).
    weights, biases = [], []
    for l in range(N_LAYERS):
        fi, fo = LAYERS[l], LAYERS[l + 1]
        key, kw, kb = jax.random.split(key, 3)
        bound = 1.0 / np.sqrt(fi)
        weights.append(jax.random.uniform(kw, (fi, fo), jnp.float32, -bound, bound))
        biases.append(jax.random.uniform(kb, (fo,), jnp.float32, -bound, bound))

    # Domain bounds (the PINN lb/ub arrays).
    lb = jnp.array([-1.0, 0.0], jnp.float32)
    ub = jnp.array([1.0, 1.0], jnp.float32)

    # Pack / pad parameters ONCE (not per forward call).
    params = pack_params(weights, biases, lb, ub)

    key, kx = jax.random.split(key)
    x = jax.random.uniform(kx, (N_BATCH, D_IN), jnp.float32,
                           minval=-1.0, maxval=1.0)

    out = dnn_forward(x, params)
    out = jax.block_until_ready(out)

    ref = dnn_reference(x, lb, ub, weights, biases)
    assert out.shape == (N_BATCH, D_OUT)
    np.testing.assert_allclose(np.asarray(out), np.asarray(ref),
                               rtol=1e-5, atol=1e-5)
    print("KERNEL_OK")
</pallas_src>

<mosaic_0001>
module attributes {stable_mosaic.version = 11 : i64} {
  func.func @dnn_kernel(%arg0: i32, %arg1: memref<256x2xf32, #tpu.memory_space<vmem>>, %arg2: memref<1x2xf32, #tpu.memory_space<vmem>>, %arg3: memref<1x2xf32, #tpu.memory_space<vmem>>, %arg4: memref<2x128xf32, #tpu.memory_space<vmem>>, %arg5: memref<1x128xf32, #tpu.memory_space<vmem>>, %arg6: memref<2x128x128xf32, #tpu.memory_space<vmem>>, %arg7: memref<2x1x128xf32, #tpu.memory_space<vmem>>, %arg8: memref<1x128xf32, #tpu.memory_space<vmem>>, %arg9: memref<1x1xf32, #tpu.memory_space<vmem>>, %arg10: memref<256x1xf32, #tpu.memory_space<vmem>>) attributes {dimension_semantics = [#tpu.dimension_semantics<parallel>], iteration_bounds = array<i64: 4>, scalar_prefetch = 0 : i64, scratch_operands = 0 : i64, tpu.core_type = #tpu.core_type<tc>, window_params = [{transform_indices = @transform_0, window_bounds = array<i64: 256, 2>}, {pipeline_mode = #tpu.pipeline_mode<synchronous>, transform_indices = @transform_1, window_bounds = array<i64: 1, 2>}, {pipeline_mode = #tpu.pipeline_mode<synchronous>, transform_indices = @transform_2, window_bounds = array<i64: 1, 2>}, {pipeline_mode = #tpu.pipeline_mode<synchronous>, transform_indices = @transform_3, window_bounds = array<i64: 2, 128>}, {pipeline_mode = #tpu.pipeline_mode<synchronous>, transform_indices = @transform_4, window_bounds = array<i64: 1, 128>}, {pipeline_mode = #tpu.pipeline_mode<synchronous>, transform_indices = @transform_5, window_bounds = array<i64: 2, 128, 128>}, {pipeline_mode = #tpu.pipeline_mode<synchronous>, transform_indices = @transform_6, window_bounds = array<i64: 2, 1, 128>}, {pipeline_mode = #tpu.pipeline_mode<synchronous>, transform_indices = @transform_7, window_bounds = array<i64: 1, 128>}, {pipeline_mode = #tpu.pipeline_mode<synchronous>, transform_indices = @transform_8, window_bounds = array<i64: 1, 1>}, {transform_indices = @transform_9, window_bounds = array<i64: 256, 1>}]} {
    %c0 = arith.constant 0 : index
    %c0_0 = arith.constant 0 : index
    %0 = vector.load %arg1[%c0, %c0_0] : memref<256x2xf32, #tpu.memory_space<vmem>>, vector<256x2xf32>
    %c0_1 = arith.constant 0 : index
    %c0_2 = arith.constant 0 : index
    %1 = vector.load %arg2[%c0_1, %c0_2] : memref<1x2xf32, #tpu.memory_space<vmem>>, vector<1x2xf32>
    %2 = vector.broadcast %1 : vector<1x2xf32> to vector<256x2xf32>
    %3 = arith.subf %0, %2 : vector<256x2xf32>
    %c0_3 = arith.constant 0 : index
    %c0_4 = arith.constant 0 : index
    %4 = vector.load %arg3[%c0_3, %c0_4] : memref<1x2xf32, #tpu.memory_space<vmem>>, vector<1x2xf32>
    %5 = vector.broadcast %4 : vector<1x2xf32> to vector<256x2xf32>
    %6 = arith.mulf %3, %5 : vector<256x2xf32>
    %c0_5 = arith.constant 0 : index
    %c0_6 = arith.constant 0 : index
    %7 = vector.load %arg5[%c0_5, %c0_6] : memref<1x128xf32, #tpu.memory_space<vmem>>, vector<1x128xf32>
    %8 = vector.extract_strided_slice %6 {offsets = [0, 0], sizes = [256, 1], strides = [1, 1]} : vector<256x2xf32> to vector<256x1xf32>
    %c0_7 = arith.constant 0 : index
    %c0_8 = arith.constant 0 : index
    %9 = vector.load %arg4[%c0_7, %c0_8] : memref<2x128xf32, #tpu.memory_space<vmem>>, vector<1x128xf32>
    %10 = vector.broadcast %8 : vector<256x1xf32> to vector<256x128xf32>
    %11 = vector.broadcast %9 : vector<1x128xf32> to vector<256x128xf32>
    %12 = arith.mulf %10, %11 : vector<256x128xf32>
    %13 = vector.broadcast %7 : vector<1x128xf32> to vector<256x128xf32>
    %14 = arith.addf %13, %12 : vector<256x128xf32>
    %15 = vector.extract_strided_slice %6 {offsets = [0, 1], sizes = [256, 1], strides = [1, 1]} : vector<256x2xf32> to vector<256x1xf32>
    %c1 = arith.constant 1 : index
    %c0_9 = arith.constant 0 : index
    %16 = vector.load %arg4[%c1, %c0_9] : memref<2x128xf32, #tpu.memory_space<vmem>>, vector<1x128xf32>
    %17 = vector.broadcast %15 : vector<256x1xf32> to vector<256x128xf32>
    %18 = vector.broadcast %16 : vector<1x128xf32> to vector<256x128xf32>
    %19 = arith.mulf %17, %18 : vector<256x128xf32>
    %20 = arith.addf %14, %19 : vector<256x128xf32>
    %21 = math.tanh %20 : vector<256x128xf32>
    %c0_10 = arith.constant 0 : index
    %c0_11 = arith.constant 0 : index
    %c0_12 = arith.constant 0 : index
    %22 = vector.load %arg6[%c0_10, %c0_11, %c0_12] : memref<2x128x128xf32, #tpu.memory_space<vmem>>, vector<1x128x128xf32>
    %23 = vector.shape_cast %22 : vector<1x128x128xf32> to vector<128x128xf32>
    %cst = arith.constant dense<0.000000e+00> : vector<256x128xf32>
    %24 = tpu.matmul %21, %23, %cst {dimension_numbers = #tpu.dot_dimension_numbers<[1], [0], [0], [1], [0, 0, 1, 1], [], []>} : vector<256x128xf32>, vector<128x128xf32>, vector<256x128xf32> -> vector<256x128xf32>
    %c0_13 = arith.constant 0 : index
    %c0_14 = arith.constant 0 : index
    %c0_15 = arith.constant 0 : index
    %25 = vector.load %arg7[%c0_13, %c0_14, %c0_15] : memref<2x1x128xf32, #tpu.memory_space<vmem>>, vector<1x1x128xf32>
    %26 = vector.shape_cast %25 : vector<1x1x128xf32> to vector<1x128xf32>
    %27 = vector.broadcast %26 : vector<1x128xf32> to vector<256x128xf32>
    %28 = arith.addf %24, %27 : vector<256x128xf32>
    %29 = math.tanh %28 : vector<256x128xf32>
    %c1_16 = arith.constant 1 : index
    %c0_17 = arith.constant 0 : index
    %c0_18 = arith.constant 0 : index
    %30 = vector.load %arg6[%c1_16, %c0_17, %c0_18] : memref<2x128x128xf32, #tpu.memory_space<vmem>>, vector<1x128x128xf32>
    %31 = vector.shape_cast %30 : vector<1x128x128xf32> to vector<128x128xf32>
    %cst_19 = arith.constant dense<0.000000e+00> : vector<256x128xf32>
    %32 = tpu.matmul %29, %31, %cst_19 {dimension_numbers = #tpu.dot_dimension_numbers<[1], [0], [0], [1], [0, 0, 1, 1], [], []>} : vector<256x128xf32>, vector<128x128xf32>, vector<256x128xf32> -> vector<256x128xf32>
    %c1_20 = arith.constant 1 : index
    %c0_21 = arith.constant 0 : index
    %c0_22 = arith.constant 0 : index
    %33 = vector.load %arg7[%c1_20, %c0_21, %c0_22] : memref<2x1x128xf32, #tpu.memory_space<vmem>>, vector<1x1x128xf32>
    %34 = vector.shape_cast %33 : vector<1x1x128xf32> to vector<1x128xf32>
    %35 = vector.broadcast %34 : vector<1x128xf32> to vector<256x128xf32>
    %36 = arith.addf %32, %35 : vector<256x128xf32>
    %37 = math.tanh %36 : vector<256x128xf32>
    %c0_23 = arith.constant 0 : index
    %c0_24 = arith.constant 0 : index
    %38 = vector.load %arg8[%c0_23, %c0_24] : memref<1x128xf32, #tpu.memory_space<vmem>>, vector<1x128xf32>
    %39 = vector.broadcast %38 : vector<1x128xf32> to vector<256x128xf32>
    %40 = arith.mulf %37, %39 : vector<256x128xf32>
    %cst_25 = arith.constant dense<0.000000e+00> : vector<256xf32>
    %41 = vector.multi_reduction <add>, %40, %cst_25 [1] : vector<256x128xf32> to vector<256xf32>
    %42 = vector.shape_cast %41 : vector<256xf32> to vector<256x1xf32>
    %c0_26 = arith.constant 0 : index
    %c0_27 = arith.constant 0 : index
    %43 = vector.load %arg9[%c0_26, %c0_27] : memref<1x1xf32, #tpu.memory_space<vmem>>, vector<1x1xf32>
    %44 = vector.broadcast %43 : vector<1x1xf32> to vector<256x1xf32>
    %45 = arith.addf %42, %44 : vector<256x1xf32>
    %c0_28 = arith.constant 0 : index
    %c0_29 = arith.constant 0 : index
    %46 = vector.load %arg10[%c0_28, %c0_29] : memref<256x1xf32, #tpu.memory_space<vmem>>, vector<256x1xf32>
    tpu.vector_store %arg10[%c0_28, %c0_29], %45 {strides = array<i32>} : memref<256x1xf32, #tpu.memory_space<vmem>>, vector<256x1xf32>,
    return
  }
  func.func @transform_0(%arg0: i32) -> (i32, i32) {
    %c0_i32 = arith.constant 0 : i32
    %c0_i32_0 = arith.constant 0 : i32
    return %arg0, %c0_i32 : i32, i32
  }
  func.func @transform_1(%arg0: i32) -> (i32, i32) {
    %c0_i32 = arith.constant 0 : i32
    %c0_i32_0 = arith.constant 0 : i32
    %c0_i32_1 = arith.constant 0 : i32
    return %c0_i32, %c0_i32_0 : i32, i32
  }
  func.func @transform_2(%arg0: i32) -> (i32, i32) {
    %c0_i32 = arith.constant 0 : i32
    %c0_i32_0 = arith.constant 0 : i32
    %c0_i32_1 = arith.constant 0 : i32
    return %c0_i32, %c0_i32_0 : i32, i32
  }
  func.func @transform_3(%arg0: i32) -> (i32, i32) {
    %c0_i32 = arith.constant 0 : i32
    %c0_i32_0 = arith.constant 0 : i32
    %c0_i32_1 = arith.constant 0 : i32
    return %c0_i32, %c0_i32_0 : i32, i32
  }
  func.func @transform_4(%arg0: i32) -> (i32, i32) {
    %c0_i32 = arith.constant 0 : i32
    %c0_i32_0 = arith.constant 0 : i32
    %c0_i32_1 = arith.constant 0 : i32
    return %c0_i32, %c0_i32_0 : i32, i32
  }
  func.func @transform_5(%arg0: i32) -> (i32, i32, i32) {
    %c0_i32 = arith.constant 0 : i32
    %c0_i32_0 = arith.constant 0 : i32
    %c0_i32_1 = arith.constant 0 : i32
    %c0_i32_2 = arith.constant 0 : i32
    return %c0_i32, %c0_i32_0, %c0_i32_1 : i32, i32, i32
  }
  func.func @transform_6(%arg0: i32) -> (i32, i32, i32) {
    %c0_i32 = arith.constant 0 : i32
    %c0_i32_0 = arith.constant 0 : i32
    %c0_i32_1 = arith.constant 0 : i32
    %c0_i32_2 = arith.constant 0 : i32
    return %c0_i32, %c0_i32_0, %c0_i32_1 : i32, i32, i32
  }
  func.func @transform_7(%arg0: i32) -> (i32, i32) {
    %c0_i32 = arith.constant 0 : i32
    %c0_i32_0 = arith.constant 0 : i32
    %c0_i32_1 = arith.constant 0 : i32
    return %c0_i32, %c0_i32_0 : i32, i32
  }
  func.func @transform_8(%arg0: i32) -> (i32, i32) {
    %c0_i32 = arith.constant 0 : i32
    %c0_i32_0 = arith.constant 0 : i32
    %c0_i32_1 = arith.constant 0 : i32
    return %c0_i32, %c0_i32_0 : i32, i32
  }
  func.func @transform_9(%arg0: i32) -> (i32, i32) {
    %c0_i32 = arith.constant 0 : i32
    %c0_i32_0 = arith.constant 0 : i32
    return %arg0, %c0_i32 : i32, i32
  }
}

</mosaic_0001>

<bundles_post_ra>
// kernel: dnn_forward.1
= control target key start
LH: loop header
LB: loop body
LE: loop exit
PB: predicated region body
PF: predicated region fallthrough
CT: control target
= control target key end

     0   :  { %s1824_s11 = smov 0   ;;  %s2450_s0 = inlined_call_operand.vmem [shape: f32[1024,2], index: 0, kind: input, shape index: {}]   ;;  %s2451_s1 = inlined_call_operand.vmem [shape: f32[1,2], index: 1, kind: input, shape index: {}]   ;;  %s2452_s2 = inlined_call_operand.vmem [shape: f32[1,2], index: 2, kind: input, shape index: {}]   ;;  %s2453_s3 = inlined_call_operand.vmem [shape: f32[2,128], index: 3, kind: input, shape index: {}]   ;;  %s2454_s4 = inlined_call_operand.vmem [shape: f32[1,128], index: 4, kind: input, shape index: {}]   ;;  %s2455_s5 = inlined_call_operand.vmem [shape: f32[2,128,128], index: 5, kind: input, shape index: {}]   ;;  %s2456_s6 = inlined_call_operand.vmem [shape: f32[2,1,128], index: 6, kind: input, shape index: {}]   ;;  %s2457_s7 = inlined_call_operand.vmem [shape: f32[1,128], index: 7, kind: input, shape index: {}]   ;;  %s2458_s8 = inlined_call_operand.<no memory space> [shape: f32[1,1], index: 8, kind: input, shape index: {}]   ;;  %s2459_s9 = inlined_call_operand.vmem [shape: f32[1024,1], index: 9, kind: output, shape index: {}]  }
   0x1   :  { %v14_v0 = vstv %s2458_s8 }
   0x2   :  { %15 = vst [vmem:[#allocation2] sm:$0x1] %v14_v0 }
   0x3 LB: > { %s1455_s12 = sadd.s32 4294967295, %s1767_s11   ;;  %p1459_p0 = scmp.ge.s32.totalorder %s1767_s11, 1  ;;  %s1767_s11 = sphi %s1824_s11, %s21_s11  }
   0x4   : > { %p290_p1 = scmp.lt.s32.totalorder %s1767_s11, 5 }
   0x6   : > { %p291_p2 = pnand %p1459_p0, %p290_p1 }
   0x7   : > { %s1460_s13 = sshll.u32 (!%p291_p2), %s1455_s12, 5 }
   0x8   : > { %294 = sbr.rel (%p291_p2) target bundleno = 759 (0x2f7), region = 56  ;;  %p327_p3 = scmp.lt.s32.totalorder (!%p291_p2), %s1460_s13, 127 }
   0xd   : > { %v1769_v1 = vmov 0   ;;  %s2461_s13 = smov (!%p327_p3, %s1460_s13), 127  ;;  %v1840_v2 = vld [vmem:[%s2451_s1] ss:$0 sm:$0xff]  ;;  %v1770_v15 = vmov 1   ;;  %v913_v49 = vld [vmem:[%s2455_s5 + $0x78] sm:$0xff] }
   0xe   : > { %1527 = vset.pattern.permute.xlu1 %v1769_v1  ;;  %1525 = vset.pattern.permute.xlu0 %v1769_v1  ;;  %s1461_s15 = sshll.u32 %s2461_s13, 3  ;;  %v1853_v3 = vld [vmem:[%s2452_s2] ss:$0 sm:$0xff]  ;;  %v912_v50 = vld [vmem:[%s2455_s5 + $0x70] sm:$0xff]  ;;  %v911_v51 = vld [vmem:[%s2455_s5 + $0x68] sm:$0xff]  ;;  %vm1366_vm0 = vcmask 7168  }
   0xf   : > { %1529 = vset.pattern.permute.xlu2 %v1769_v1  ;;  %s1848_s18 = scalar_lea.vmem %s2450_s0, %s1461_s15  ;;  %918 = vmatpush.msra.mxu0 %v913_v49  ;;  %v910_v54 = vld [vmem:[%s2455_s5 + $0x60] sm:$0xff]  ;;  %v909_v56 = vld [vmem:[%s2455_s5 + $0x58] sm:$0xff]  ;;  %v908_v57 = vld [vmem:[%s2455_s5 + $0x50] sm:$0xff]  ;;  %s2314_s24 = scalar_lea.vmem %s2459_s9, %s1461_s15 }
  0x10   : > { %v355_v4 = vld [vmem:[%s1848_s18 + $0x88] sm:$0xff]  ;;  %v354_v5 = vld [vmem:[%s1848_s18 + $0x80] sm:$0xff]  ;;  %v340_v13 = vld [vmem:[%s1848_s18 + $0x10] sm:$0xff]  ;;  %1483 = vmatpush.msra.mxu2 %v913_v49 }
  0x11   : > { %v391_v6 = vsub.f32 %v355_v4, %v1840_v2  ;;  %v390_v7 = vsub.f32 %v354_v5, %v1840_v2  ;;  %v338_v8 = vld [vmem:[%s1848_s18] sm:$0xff]  ;;  %v356_v14 = vld [vmem:[%s1848_s18 + $0x90] sm:$0xff]  ;;  %v376_v16 = vsub.f32 %v340_v13, %v1840_v2  ;;  %v339_v20 = vld [vmem:[%s1848_s18 + $0x8] sm:$0xff]  ;;  %919 = vmatpush.msra.mxu0 %v912_v50 }
  0x12   : > { %v374_v9 = vsub.f32 %v338_v8, %v1840_v2  ;;  %v392_v17 = vsub.f32 %v356_v14, %v1840_v2  ;;  %v375_v21 = vsub.f32 %v339_v20, %v1840_v2  ;;  %v357_v22 = vld [vmem:[%s1848_s18 + $0x98] sm:$0xff]  ;;  %v359_v25 = vld [vmem:[%s1848_s18 + $0xa8] sm:$0xff]  ;;  %v344_v29 = vld [vmem:[%s1848_s18 + $0x30] sm:$0xff]  ;;  %1484 = vmatpush.msra.mxu2 %v912_v50 }
  0x13   : > { %v427_v10 = vmul.f32 %v1853_v3, %v391_v6  ;;  %v426_v11 = vmul.f32 %v1853_v3, %v390_v7  ;;  %v412_v18 = vmul.f32 %v1853_v3, %v376_v16  ;;  %v393_v24 = vsub.f32 %v357_v22, %v1840_v2  ;;  %v358_v30 = vld [vmem:[%s1848_s18 + $0xa0] sm:$0xff]  ;;  %v360_v35 = vld [vmem:[%s1848_s18 + $0xb0] sm:$0xff]  ;;  %v341_v36 = vld [vmem:[%s1848_s18 + $0x18] sm:$0xff]  ;;  %920 = vmatpush.msra.mxu0 %v911_v51 }
  0x14   : > { %v410_v12 = vmul.f32 %v1853_v3, %v374_v9  ;;  %v428_v19 = vmul.f32 %v1853_v3, %v392_v17  ;;  %v411_v23 = vmul.f32 %v1853_v3, %v375_v21  ;;  %v395_v27 = vsub.f32 %v359_v25, %v1840_v2  ;;  %v342_v41 = vld [vmem:[%s1848_s18 + $0x20] sm:$0xff]  ;;  %v345_v44 = vld [vmem:[%s1848_s18 + $0x38] sm:$0xff]  ;;  %v343_v47 = vld [vmem:[%s1848_s18 + $0x28] sm:$0xff]  ;;  %1485 = vmatpush.msra.mxu2 %v911_v51 }
  0x15   : > { %531 = vperm.xlu1 %1527, %v427_v10   ;;  %526 = vperm.xlu0 %1525, %v426_v11   ;;  %v429_v26 = vmul.f32 %v1853_v3, %v393_v24  ;;  %v380_v31 = vsub.f32 %v344_v29, %v1840_v2  ;;  %v394_v32 = vsub.f32 %v358_v30, %v1840_v2  ;;  %v361_v53 = vld [vmem:[%s1848_s18 + $0xb8] sm:$0xff]  ;;  %v907_v61 = vld [vmem:[%s2455_s5 + $0x48] sm:$0xff]  ;;  %v906_v63 = vld [vmem:[%s2455_s5 + $0x40] sm:$0xff] }
  0x16   : > { %446 = vperm.xlu2 %1529, %v410_v12   ;;  %v431_v28 = vmul.f32 %v1853_v3, %v395_v27  ;;  %v396_v37 = vsub.f32 %v360_v35, %v1840_v2  ;;  %v377_v38 = vsub.f32 %v341_v36, %v1840_v2  ;;  %v378_v42 = vsub.f32 %v342_v41, %v1840_v2  ;;  %v365_v58 = vld [vmem:[%s1848_s18 + $0xd8] sm:$0xff]  ;;  %v362_v4 = vld [vmem:[%s1848_s18 + $0xc0] sm:$0xff]  ;;  %v904_v5 = vld [vmem:[%s2455_s5 + $0x30] sm:$0xff] }
  0x17   : > { %v1891_v33 = vmul.f32 %v1853_v3, %v380_v31  ;;  %v430_v34 = vmul.f32 %v1853_v3, %v394_v32  ;;  %v381_v45 = vsub.f32 %v345_v44, %v1840_v2  ;;  %v379_v48 = vsub.f32 %v343_v47, %v1840_v2  ;;  %921 = vmatpush.msra.mxu0 %v910_v54  ;;  %v905_v0 = vld [vmem:[%s2455_s5 + $0x38] sm:$0xff]  ;;  %v364_v8 = vld [vmem:[%s1848_s18 + $0xd0] sm:$0xff]  ;;  %v903_v9 = vld [vmem:[%s2455_s5 + $0x28] sm:$0xff] }
  0x18   : > { %v432_v39 = vmul.f32 %v1853_v3, %v396_v37  ;;  %v413_v40 = vmul.f32 %v1853_v3, %v377_v38  ;;  %v414_v43 = vmul.f32 %v1853_v3, %v378_v42  ;;  %v397_v55 = vsub.f32 %v361_v53, %v1840_v2  ;;  %1486 = vmatpush.msra.mxu2 %v910_v54  ;;  %v902_v13 = vld [vmem:[%s2455_s5 + $0x20] sm:$0xff]  ;;  %v901_v17 = vld [vmem:[%s2455_s5 + $0x18] sm:$0xff]  ;;  %v899_v21 = vld [vmem:[%s2455_s5 + $0x8] sm:$0xff] }
  0x19   : > { %v1912_v46 = vmul.f32 %v1853_v3, %v381_v45  ;;  %v415_v52 = vmul.f32 %v1853_v3, %v379_v48  ;;  %922 = vmatpush.msra.mxu0 %v909_v56  ;;  %v401_v60 = vsub.f32 %v365_v58, %v1840_v2  ;;  %v398_v6 = vsub.f32 %v362_v4, %v1840_v2  ;;  %v1997_v20 = vld [vmem:[%s2453_s3 + $0x1] ss:$0 sm:$0xff]  ;;  %v349_v45 = vld [vmem:[%s1848_s18 + $0x58] sm:$0xff] }
  0x1a   : > { %v433_v59 = vmul.f32 %v1853_v3, %v397_v55  ;;  %1487 = vmatpush.msra.mxu2 %v909_v56  ;;  %v346_v30 = vld [vmem:[%s1848_s18 + $0x40] sm:$0xff]  ;;  %v385_v48 = vsub.f32 %v349_v45, %v1840_v2 }
  0x1b   : > { %923 = vmatpush.msra.mxu0 %v908_v57  ;;  %v1947_v62 = vmul.f32 %v1853_v3, %v401_v60 }
  0x1c   : > { %1488 = vmatpush.msra.mxu2 %v908_v57  ;;  %v2028_v51 = vmul.f32 %v1853_v3, %v385_v48 }
  0x1d   : > { %1528 = vset.pattern.permute.xlu1 %v1770_v15  ;;  %1526 = vset.pattern.permute.xlu0 %v1770_v15 }
  0x1e   : > { %742 = vperm.xlu1 %1528, %v427_v10   ;;  %738 = vperm.xlu0 %1526, %v426_v11   ;;  %v400_v10 = vsub.f32 %v364_v8, %v1840_v2  ;;  %v434_v11 = vmul.f32 %v1853_v3, %v398_v6 }
  0x1f   : > { %1530 = vset.pattern.permute.xlu2 %v1770_v15  ;;  %924 = vmatpush.msra.mxu0 %v907_v61 }
  0x20   : > { %674 = vperm.xlu2 %1530, %v410_v12   ;;  %1489 = vmatpush.msra.mxu2 %v907_v61  ;;  %v1971_v12 = vld [vmem:[%s2453_s3] ss:$0 sm:$0xff]  ;;  %v1977_v14 = vmul.f32 %v1853_v3, %v400_v10 }
  0x21   : > { %925 = vmatpush.msra.mxu0 %v906_v63  ;;  %v350_v61 = vld [vmem:[%s1848_s18 + $0x60] sm:$0xff] }
  0x22   : > { %1490 = vmatpush.msra.mxu2 %v906_v63  ;;  %v386_v63 = vsub.f32 %v350_v61, %v1840_v2 }
  0x23   : > { %926 = vmatpush.msra.mxu0 %v905_v0 }
  0x24   : > { %1491 = vmatpush.msra.mxu2 %v905_v0 }
  0x25   : > { %927 = vmatpush.msra.mxu0 %v904_v5 }
  0x26   : > { %1531 = vset.pattern.permute.xlu1 %v1769_v1  ;;  %682 = vperm.xlu0 %1526, %v412_v18  }
  0x27   : > { %536 = vperm.xlu1 %1531, %v428_v19   ;;  %1492 = vmatpush.msra.mxu2 %v904_v5  ;;  %v2044_v5 = vmul.f32 %v1853_v3, %v386_v63 }
  0x28   : > { %746 = vperm.xlu2 %1530, %v428_v19   ;;  %928 = vmatpush.msra.mxu0 %v903_v9  ;;  %v1992_v19 = vld [vmem:[%s2454_s4] ss:$0 sm:$0xff] }
  0x29   : > { %1493 = vmatpush.msra.mxu2 %v903_v9 }
  0x2a   : > { %929 = vmatpush.msra.mxu0 %v902_v13 }
  0x2b   : > { %1494 = vmatpush.msra.mxu2 %v902_v13 }
  0x2c   : > { %930 = vmatpush.msra.mxu0 %v901_v17 }
  0x2d   : > { %1495 = vmatpush.msra.mxu2 %v901_v17  ;;  %v366_v17 = vld [vmem:[%s1848_s18 + $0xe0] sm:$0xff] }
  0x2e   : > { %1534 = vset.pattern.permute.xlu0 %v1769_v1 }
  0x2f   : > { %1532 = vset.pattern.permute.xlu1 %v1770_v15  ;;  %451 = vperm.xlu0 %1534, %v411_v23  }
  0x30   : > { %678 = vperm.xlu1 %1532, %v411_v23   ;;  %1533 = vset.pattern.permute.xlu2 %v1769_v1  ;;  %v363_v23 = vld [vmem:[%s1848_s18 + $0xc8] sm:$0xff] }
  0x31   : > { %541 = vperm.xlu2 %1533, %v429_v26   ;;  %v399_v27 = vsub.f32 %v363_v23, %v1840_v2 }
  0x33   : > { %v435_v29 = vmul.f32 %v1853_v3, %v399_v27 }
  0x37   : > { %551 = vperm.xlu0 %1534, %v431_v28  }
  0x38   : > { %750 = vperm.xlu1 %1532, %v429_v26   ;;  %v898_v26 = vld [vmem:[%s2455_s5] sm:$0xff] }
  0x39   : > { %456 = vperm.xlu2 %1533, %v412_v18   ;;  %v900_v18 = vld [vmem:[%s2455_s5 + $0x10] sm:$0xff] }
  0x3a   : > { %931 = vmatpush.msra.mxu0 %v900_v18  ;;  %1496 = vmatpush.msra.mxu2 %v900_v18 }
  0x3c   : > { %932 = vmatpush.msra.mxu0 %v899_v21  ;;  %1497 = vmatpush.msra.mxu2 %v899_v21 }
  0x3e   : > { %933 = vmatpush.msra.mxu0 %v898_v26  ;;  %1498 = vmatpush.msra.mxu2 %v898_v26 }
  0x3f   : > { %476 = vperm.xlu0 %1534, %v1891_v33  }
  0x40   : > { %1535 = vset.pattern.permute.xlu1 %v1769_v1 }
  0x41   : > { %546 = vperm.xlu1 %1535, %v430_v34   ;;  %1536 = vset.pattern.permute.xlu2 %v1770_v15 }
  0x42   : > { %754 = vperm.xlu2 %1536, %v430_v34  }
  0x47   : > { %1541 = vset.pattern.permute.xlu0 %v1770_v15 }
  0x48   : > { %762 = vperm.xlu0 %1541, %v432_v39  }
  0x49   : > { %461 = vperm.xlu1 %1535, %v413_v40  }
  0x4a   : > { %686 = vperm.xlu2 %1536, %v413_v40  }
  0x50   : > { %702 = vperm.xlu0 %1541, %v1912_v46  }
  0x51   : > { %1537 = vset.pattern.permute.xlu1 %v1770_v15 }
  0x52   : > { %758 = vperm.xlu1 %1537, %v431_v28   ;;  %1538 = vset.pattern.permute.xlu2 %v1769_v1 }
  0x53   : > { %466 = vperm.xlu2 %1538, %v414_v43  }
  0x58   : > { %782 = vperm.xlu0 %1541, %v1947_v62  }
  0x5a   : > { %690 = vperm.xlu1 %1537, %v414_v43  }
  0x5b   : > { %556 = vperm.xlu2 %1538, %v432_v39   ;;  %v347_v39 = vld [vmem:[%s1848_s18 + $0x48] sm:$0xff] }
  0x5c   : > { %v383_v44 = vsub.f32 %v347_v39, %v1840_v2 }
  0x5e   : > { %v419_v50 = vmul.f32 %v1853_v3, %v383_v44 }
  0x60   : > { %1548 = vset.pattern.permute.xlu0 %v1769_v1 }
  0x61   : > { %576 = vperm.xlu0 %1548, %v1977_v14  }
  0x62   : > { %1539 = vset.pattern.permute.xlu1 %v1769_v1 }
  0x63   : > { %471 = vperm.xlu1 %1539, %v415_v52   ;;  %1540 = vset.pattern.permute.xlu2 %v1770_v15 }
  0x64   : > { %694 = vperm.xlu2 %1540, %v415_v52  }
  0x69   : > { %501 = vperm.xlu0 %1548, %v2028_v51  }
  0x6b   : > { %561 = vperm.xlu1 %1539, %v433_v59  }
  0x6c   : > { %766 = vperm.xlu2 %1540, %v433_v59   ;;  %v348_v59 = vld [vmem:[%s1848_s18 + $0x50] sm:$0xff] }
  0x6d   : > { %v384_v4 = vsub.f32 %v348_v59, %v1840_v2 }
  0x70   : > { %v447_v7 = vpop.permute.xlu2 %446 }
  0x71   : > { %v605_v16 = vmul.f32 %v1971_v12, %v447_v7  ;;  %1553 = vset.pattern.permute.xlu0 %v1770_v15 }
  0x72   : > { %722 = vperm.xlu0 %1553, %v2044_v5  }
  0x73   : > { %1542 = vset.pattern.permute.xlu1 %v1770_v15  ;;  %v640_v22 = vadd.f32 %v1992_v19, %v605_v16 }
  0x74   : > { %698 = vperm.xlu1 %1542, %v1891_v33   ;;  %1543 = vset.pattern.permute.xlu2 %v1769_v1  ;;  %v382_v33 = vsub.f32 %v346_v30, %v1840_v2 }
  0x75   : > { %566 = vperm.xlu2 %1543, %v434_v11  }
  0x76   : > { %v418_v36 = vmul.f32 %v1853_v3, %v382_v33 }
  0x7a   : > { %v675_v24 = vpop.permute.xlu2 %674  ;;  %1556 = vset.pattern.permute.xlu0 %v1769_v1 }
  0x7b   : > { %v802_v25 = vmul.f32 %v1997_v20, %v675_v24 }
  0x7c   : > { %770 = vperm.xlu1 %1542, %v434_v11  }
  0x7d   : > { %v834_v28 = vadd.f32 %v802_v25, %v640_v22  ;;  %481 = vperm.xlu2 %1543, %v1912_v46   ;;  %v402_v25 = vsub.f32 %v366_v17, %v1840_v2 }
  0x7f   : > { %1569 = vtanh.f32 %v834_v28  ;;  %v438_v30 = vmul.f32 %v1853_v3, %v402_v25 }
  0x82   : > { %v747_v31 = vpop.permute.xlu2 %746 }
  0x83   : > { %v820_v6 = vmul.f32 %v1997_v20, %v747_v31 }
  0x84   : > { %1544 = vset.pattern.permute.xlu1 %v1769_v1 }
  0x85   : > { %v1570_v32 = vpop.eup %1569  ;;  %571 = vperm.xlu1 %1544, %v435_v29   ;;  %1545 = vset.pattern.permute.xlu2 %v1770_v15 }
  0x86   : > { %774 = vperm.xlu2 %1545, %v435_v29   ;;  %934 = vmatmul.f32.vlgmr.msra.gmra.mxu0 %v1570_v32 }
  0x87   : > { %v532_v34 = vpop.permute.xlu1 %531  ;;  %v527_v35 = vpop.permute.xlu0 %526 }
  0x88   : > { %v621_v37 = vmul.f32 %v1971_v12, %v527_v35  ;;  %v622_v49 = vmul.f32 %v1971_v12, %v532_v34 }
  0x8a   : > { %v656_v40 = vadd.f32 %v1992_v19, %v621_v37  ;;  %v657_v53 = vadd.f32 %v1992_v19, %v622_v49 }
  0x8b   : > { %v542_v38 = vpop.permute.xlu2 %541 }
  0x8c   : > { %v624_v21 = vmul.f32 %v1971_v12, %v542_v38 }
  0x8d   : > { %486 = vperm.xlu1 %1544, %v418_v36  }
  0x8e   : > { %706 = vperm.xlu2 %1545, %v418_v36   ;;  %v659_v26 = vadd.f32 %v1992_v19, %v624_v21  ;;  %v367_v36 = vld [vmem:[%s1848_s18 + $0xe8] sm:$0xff] }
  0x8f   : > { %v403_v38 = vsub.f32 %v367_v36, %v1840_v2 }
  0x90   : > { %v743_v41 = vpop.permute.xlu1 %742  ;;  %v739_v42 = vpop.permute.xlu0 %738 }
  0x91   : > { %v818_v43 = vmul.f32 %v1997_v20, %v739_v42  ;;  %v819_v52 = vmul.f32 %v1997_v20, %v743_v41  ;;  %v369_v42 = vld [vmem:[%s1848_s18 + $0xf8] sm:$0xff] }
  0x92   : > { %v405_v45 = vsub.f32 %v369_v42, %v1840_v2 }
  0x93   : > { %v850_v46 = vadd.f32 %v818_v43, %v656_v40  ;;  %v457_v47 = vpop.permute.xlu2 %456  ;;  %v851_v56 = vadd.f32 %v819_v52, %v657_v53 }
  0x94   : > { %v607_v11 = vmul.f32 %v1971_v12, %v457_v47  ;;  %v439_v47 = vmul.f32 %v1853_v3, %v403_v38  ;;  %v2074_v48 = vmul.f32 %v1853_v3, %v405_v45 }
  0x95   : > { %1546 = vset.pattern.permute.xlu1 %v1770_v15  ;;  %1571 = vtanh.f32 %v850_v46 }
  0x96   : > { %778 = vperm.xlu1 %1546, %v1977_v14   ;;  %1547 = vset.pattern.permute.xlu2 %v1769_v1  ;;  %1573 = vtanh.f32 %v851_v56  ;;  %v642_v24 = vadd.f32 %v1992_v19, %v607_v11  ;;  %v368_v56 = vld [vmem:[%s1848_s18 + $0xf0] sm:$0xff]  ;;  %v351_v11 = vld [vmem:[%s1848_s18 + $0x68] sm:$0xff] }
  0x97   : > { %491 = vperm.xlu2 %1547, %v419_v50   ;;  %601 = vperm.xlu0 %1556, %v2074_v48   ;;  %v404_v63 = vsub.f32 %v368_v56, %v1840_v2 }
  0x98   : > { %v683_v54 = vpop.permute.xlu0 %682 }
  0x99   : > { %v537_v55 = vpop.permute.xlu1 %536  ;;  %v804_v22 = vmul.f32 %v1997_v20, %v683_v54 }
  0x9a   : > { %v623_v57 = vmul.f32 %v1971_v12, %v537_v55 }
  0x9b   : > { %v1572_v58 = vpop.eup %1571  ;;  %v836_v27 = vadd.f32 %v804_v22, %v642_v24 }
  0x9c   : > { %v755_v60 = vpop.permute.xlu2 %754  ;;  %982 = vmatmul.f32.vlgmr.msra.gmra.mxu2 %v1572_v58  ;;  %v658_v0 = vadd.f32 %v1992_v19, %v623_v57  ;;  %v1574_v14 = vpop.eup %1573  ;;  %v353_v58 = vld [vmem:[%s1848_s18 + $0x78] sm:$0xff] }
  0x9d   : > { %v822_v40 = vmul.f32 %v1997_v20, %v755_v60  ;;  %v389_v59 = vsub.f32 %v353_v58, %v1840_v2 }
  0x9e   : > { %710 = vperm.xlu1 %1546, %v419_v50   ;;  %v852_v8 = vadd.f32 %v820_v6, %v658_v0 }
  0x9f   : > { %581 = vperm.xlu2 %1547, %v1947_v62   ;;  %v420_v62 = vmul.f32 %v1853_v3, %v384_v4  ;;  %v2091_v0 = vmul.f32 %v1853_v3, %v389_v59  ;;  %1559 = vset.pattern.permute.xlu0 %v1770_v15  ;;  %v1475_v59 = vld [vmem:[%s2455_s5 + $0xd8] sm:$0xff] }
  0xa0   : > { %1575 = vtanh.f32 %v852_v8 }
  0xa1   : > { %v452_v7 = vpop.permute.xlu0 %451  ;;  %734 = vperm.xlu0 %1559, %v2091_v0  }
  0xa2   : > { %v606_v9 = vmul.f32 %v1971_v12, %v452_v7  ;;  %v679_v10 = vpop.permute.xlu1 %678 }
  0xa3   : > { %v803_v13 = vmul.f32 %v1997_v20, %v679_v10  ;;  %v440_v10 = vmul.f32 %v1853_v3, %v404_v63  ;;  %v1474_v63 = vld [vmem:[%s2455_s5 + $0xd0] sm:$0xff] }
  0xa4   : > { %v641_v16 = vadd.f32 %v1992_v19, %v606_v9  ;;  %v687_v18 = vpop.permute.xlu2 %686  ;;  %985 = vmatmul.f32.gmra.mxu2 %v1574_v14 }
  0xa5   : > { %v805_v54 = vmul.f32 %v1997_v20, %v687_v18  ;;  %v387_v18 = vsub.f32 %v351_v11, %v1840_v2  ;;  %v1471_v11 = vld [vmem:[%s2455_s5 + $0xb8] sm:$0xff] }
  0xa6   : > { %v835_v23 = vadd.f32 %v803_v13, %v641_v16  ;;  %1549 = vset.pattern.permute.xlu1 %v1769_v1  ;;  %v1576_v31 = vpop.eup %1575 }
  0xa7   : > { %496 = vperm.xlu1 %1549, %v420_v62   ;;  %1550 = vset.pattern.permute.xlu2 %v1770_v15  ;;  %v423_v25 = vmul.f32 %v1853_v3, %v387_v18 }
  0xa8   : > { %1577 = vtanh.f32 %v835_v23  ;;  %714 = vperm.xlu2 %1550, %v420_v62  }
  0xa9   : > { %1579 = vtanh.f32 %v836_v27  ;;  %v552_v35 = vpop.permute.xlu0 %551 }
  0xaa   : > { %v751_v28 = vpop.permute.xlu1 %750 }
  0xab   : > { %v821_v29 = vmul.f32 %v1997_v20, %v751_v28 }
  0xac   : > { %988 = vmatmul.f32.gmra.mxu2 %v1576_v31 }
  0xad   : > { %v853_v32 = vadd.f32 %v821_v29, %v659_v26  ;;  %v467_v33 = vpop.permute.xlu2 %466  ;;  %v352_v29 = vld [vmem:[%s1848_s18 + $0x70] sm:$0xff] }
  0xae   : > { %v1578_v34 = vpop.eup %1577  ;;  %v609_v13 = vmul.f32 %v1971_v12, %v467_v33 }
  0xaf   : > { %1581 = vtanh.f32 %v853_v32  ;;  %586 = vperm.xlu1 %1549, %v438_v30   ;;  %937 = vmatmul.f32.gmra.mxu0 %v1578_v34  ;;  %v1580_v39 = vpop.eup %1579  ;;  %v388_v34 = vsub.f32 %v352_v29, %v1840_v2 }
  0xb0   : > { %786 = vperm.xlu2 %1550, %v438_v30   ;;  %v644_v21 = vadd.f32 %v1992_v19, %v609_v13 }
  0xb1   : > { %v2079_v50 = vpop.permute.xlu0 %476 }
  0xb3   : > { %v547_v37 = vpop.permute.xlu1 %546 }
  0xb4   : > { %v625_v41 = vmul.f32 %v1971_v12, %v547_v37 }
  0xb5   : > { %v1582_v43 = vpop.eup %1581  ;;  %v557_v44 = vpop.permute.xlu2 %556 }
  0xb6   : > { %v660_v46 = vadd.f32 %v1992_v19, %v625_v41  ;;  %991 = vmatmul.f32.gmra.mxu2 %v1582_v43  ;;  %v627_v6 = vmul.f32 %v1971_v12, %v557_v44 }
  0xb7   : > { %1551 = vset.pattern.permute.xlu1 %v1770_v15  ;;  %940 = vmatmul.f32.gmra.mxu0 %v1580_v39  ;;  %v424_v39 = vmul.f32 %v1853_v3, %v388_v34 }
  0xb8   : > { %v854_v49 = vadd.f32 %v822_v40, %v660_v46  ;;  %718 = vperm.xlu1 %1551, %v2028_v51   ;;  %1552 = vset.pattern.permute.xlu2 %v1769_v1  ;;  %v626_v51 = vmul.f32 %v1971_v12, %v552_v35  ;;  %v662_v14 = vadd.f32 %v1992_v19, %v627_v6 }
  0xb9   : > { %591 = vperm.xlu2 %1552, %v439_v47  }
  0xba   : > { %1583 = vtanh.f32 %v854_v49  ;;  %v661_v4 = vadd.f32 %v1992_v19, %v626_v51  ;;  %v763_v8 = vpop.permute.xlu0 %762  ;;  %v1478_v49 = vld [vmem:[%s2455_s5 + $0xf0] sm:$0xff]  ;;  %v1476_v51 = vld [vmem:[%s2455_s5 + $0xe0] sm:$0xff] }
  0xbb   : > { %v462_v52 = vpop.permute.xlu1 %461  ;;  %v824_v16 = vmul.f32 %v1997_v20, %v763_v8 }
  0xbc   : > { %v608_v53 = vmul.f32 %v1971_v12, %v462_v52 }
  0xbd   : > { %v856_v22 = vadd.f32 %v824_v16, %v662_v14 }
  0xbe   : > { %v643_v55 = vadd.f32 %v1992_v19, %v608_v53  ;;  %v695_v57 = vpop.permute.xlu2 %694 }
  0xbf   : > { %v807_v32 = vmul.f32 %v1997_v20, %v695_v57 }
  0xc0   : > { %v1584_v60 = vpop.eup %1583  ;;  %v837_v61 = vadd.f32 %v805_v54, %v643_v55  ;;  %790 = vperm.xlu1 %1551, %v439_v47  }
  0xc1   : > { %994 = vmatmul.f32.gmra.mxu2 %v1584_v60  ;;  %506 = vperm.xlu2 %1552, %v2044_v5  }
  0xc2   : > { %1585 = vtanh.f32 %v837_v61  ;;  %v703_v47 = vpop.permute.xlu0 %702 }
  0xc3   : > { %v809_v53 = vmul.f32 %v1997_v20, %v703_v47 }
  0xc4   : > { %v759_v7 = vpop.permute.xlu1 %758 }
  0xc5   : > { %v823_v9 = vmul.f32 %v1997_v20, %v759_v7 }
  0xc6   : > { %v767_v5 = vpop.permute.xlu2 %766 }
  0xc7   : > { %v855_v62 = vadd.f32 %v823_v9, %v661_v4  ;;  %v825_v41 = vmul.f32 %v1997_v20, %v767_v5  ;;  %v1473_v4 = vld [vmem:[%s2455_s5 + $0xc8] sm:$0xff]  ;;  %v1472_v9 = vld [vmem:[%s2455_s5 + $0xc0] sm:$0xff]  ;;  %v1470_v5 = vld [vmem:[%s2455_s5 + $0xb0] sm:$0xff] }
  0xc8   : > { %v1586_v17 = vpop.eup %1585  ;;  %1554 = vset.pattern.permute.xlu1 %v1769_v1 }
  0xc9   : > { %1587 = vtanh.f32 %v855_v62  ;;  %596 = vperm.xlu1 %1554, %v440_v10   ;;  %943 = vmatmul.f32.gmra.mxu0 %v1586_v17  ;;  %v1469_v62 = vld [vmem:[%s2455_s5 + $0xa8] sm:$0xff] }
  0xca   : > { %1555 = vset.pattern.permute.xlu2 %v1770_v15  ;;  %1589 = vtanh.f32 %v856_v22  ;;  %v783_v13 = vpop.permute.xlu0 %782 }
  0xcb   : > { %794 = vperm.xlu2 %1555, %v440_v10  }
  0xcc   : > { %v691_v23 = vpop.permute.xlu1 %690 }
  0xcd   : > { %v806_v24 = vmul.f32 %v1997_v20, %v691_v23  ;;  %v1468_v23 = vld [vmem:[%s2455_s5 + $0xa0] sm:$0xff] }
  0xcf   : > { %v1588_v26 = vpop.eup %1587  ;;  %v838_v27 = vadd.f32 %v806_v24, %v644_v21  ;;  %v567_v28 = vpop.permute.xlu2 %566 }
  0xd0   : > { %997 = vmatmul.f32.gmra.mxu2 %v1588_v26  ;;  %v1590_v30 = vpop.eup %1589  ;;  %v629_v54 = vmul.f32 %v1971_v12, %v567_v28 }
  0xd1   : > { %1591 = vtanh.f32 %v838_v27  ;;  %511 = vperm.xlu1 %1554, %v423_v25   ;;  %v1466_v27 = vld [vmem:[%s2455_s5 + $0x90] sm:$0xff] }
  0xd2   : > { %v664_v60 = vadd.f32 %v1992_v19, %v629_v54 }
  0xd3   : > { %726 = vperm.xlu2 %1555, %v423_v25   ;;  %v1467_v25 = vld [vmem:[%s2455_s5 + $0x98] sm:$0xff] }
  0xd5   : > { %v472_v31 = vpop.permute.xlu1 %471 }
  0xd6   : > { %v610_v33 = vmul.f32 %v1971_v12, %v472_v31  ;;  %v2186_v31 = vld [vmem:[%s2456_s6] ss:$0 sm:$0xff] }
  0xd7   : > { %v1592_v35 = vpop.eup %1591  ;;  %v482_v36 = vpop.permute.xlu2 %481 }
  0xd8   : > { %v645_v37 = vadd.f32 %v1992_v19, %v610_v33  ;;  %946 = vmatmul.f32.gmra.mxu0 %v1592_v35  ;;  %1000 = vmatmul.f32.gmra.mxu2 %v1590_v30  ;;  %v612_v46 = vmul.f32 %v1971_v12, %v482_v36  ;;  %v577_v30 = vpop.permute.xlu0 %576  ;;  %v1464_v35 = vld [vmem:[%s2455_s5 + $0x80] sm:$0xff] }
  0xd9   : > { %1557 = vset.pattern.permute.xlu1 %v1770_v15  ;;  %v611_v15 = vmul.f32 %v1971_v12, %v2079_v50  ;;  %v1477_v50 = vld [vmem:[%s2455_s5 + $0xe8] sm:$0xff]  ;;  %v631_v36 = vmul.f32 %v1971_v12, %v577_v30 }
  0xda   : > { %v839_v38 = vadd.f32 %v807_v32, %v645_v37  ;;  %798 = vperm.xlu1 %1557, %v2074_v48   ;;  %v647_v56 = vadd.f32 %v1992_v19, %v612_v46  ;;  %v1465_v32 = vld [vmem:[%s2455_s5 + $0x88] sm:$0xff] }
  0xdb   : > { %1558 = vset.pattern.permute.xlu2 %v1769_v1  ;;  %v1479_v1 = vld [vmem:[%s2455_s5 + $0xf8] sm:$0xff]  ;;  %v646_v3 = vadd.f32 %v1992_v19, %v611_v15 }
  0xdc   : > { %1593 = vtanh.f32 %v839_v38  ;;  %516 = vperm.xlu2 %1558, %v424_v39   ;;  %1085 = vmatpush.msra.mxu1 %v1479_v1  ;;  %v841_v61 = vadd.f32 %v809_v53, %v647_v56 }
  0xdd   : > { %v562_v40 = vpop.permute.xlu1 %561  ;;  %1499 = vmatpush.msra.mxu3 %v1479_v1 }
  0xde   : > { %v628_v2 = vmul.f32 %v1971_v12, %v562_v40  ;;  %1086 = vmatpush.msra.mxu1 %v1478_v49 }
  0xdf   : > { %1500 = vmatpush.msra.mxu3 %v1478_v49 }
  0xe0   : > { %v663_v42 = vadd.f32 %v1992_v19, %v628_v2  ;;  %v2121_v43 = vpop.permute.xlu2 %774  ;;  %1087 = vmatpush.msra.mxu1 %v1477_v50  ;;  %v666_v2 = vadd.f32 %v1992_v19, %v631_v36 }
  0xe1   : > { %1501 = vmatpush.msra.mxu3 %v1477_v50  ;;  %v827_v17 = vmul.f32 %v1997_v20, %v2121_v43 }
  0xe2   : > { %v1594_v44 = vpop.eup %1593  ;;  %v857_v45 = vadd.f32 %v825_v41, %v663_v42  ;;  %730 = vperm.xlu1 %1557, %v424_v39   ;;  %1088 = vmatpush.msra.mxu1 %v1476_v51 }
  0xe3   : > { %949 = vmatmul.f32.gmra.mxu0 %v1594_v44  ;;  %1502 = vmatpush.msra.mxu3 %v1476_v51  ;;  %v829_v44 = vmul.f32 %v1997_v20, %v783_v13 }
  0xe4   : > { %1595 = vtanh.f32 %v857_v45  ;;  %521 = vperm.xlu2 %1558, %v2091_v0   ;;  %1089 = vmatpush.msra.mxu1 %v1475_v59 }
  0xe5   : > { %1503 = vmatpush.msra.mxu3 %v1475_v59 }
  0xe6   : > { %v699_v48 = vpop.permute.xlu1 %698  ;;  %1090 = vmatpush.msra.mxu1 %v1474_v63 }
  0xe7   : > { %v808_v52 = vmul.f32 %v1997_v20, %v699_v48  ;;  %1504 = vmatpush.msra.mxu3 %v1474_v63 }
  0xe8   : > { %v2141_v58 = vpop.permute.xlu2 %706  ;;  %1091 = vmatpush.msra.mxu1 %v1473_v4 }
  0xe9   : > { %v840_v55 = vadd.f32 %v808_v52, %v646_v3  ;;  %1505 = vmatpush.msra.mxu3 %v1473_v4  ;;  %v810_v33 = vmul.f32 %v1997_v20, %v2141_v58 }
  0xea   : > { %v1596_v57 = vpop.eup %1595  ;;  %1092 = vmatpush.msra.mxu1 %v1472_v9 }
  0xeb   : > { %1597 = vtanh.f32 %v840_v55  ;;  %1003 = vmatmul.f32.gmra.mxu2 %v1596_v57  ;;  %1506 = vmatpush.msra.mxu3 %v1472_v9 }
  0xec   : > { %1599 = vtanh.f32 %v841_v61  ;;  %1093 = vmatpush.msra.mxu1 %v1471_v11 }
  0xed   : > { %1507 = vmatpush.msra.mxu3 %v1471_v11 }
  0xee   : > { %v771_v0 = vpop.permute.xlu1 %770  ;;  %1094 = vmatpush.msra.mxu1 %v1470_v5 }
  0xef   : > { %v826_v6 = vmul.f32 %v1997_v20, %v771_v0  ;;  %1508 = vmatpush.msra.mxu3 %v1470_v5 }
  0xf0   : > { %1095 = vmatpush.msra.mxu1 %v1469_v62 }
  0xf1   : > { %v1598_v7 = vpop.eup %1597  ;;  %v858_v8 = vadd.f32 %v826_v6, %v664_v60  ;;  %v492_v10 = vpop.permute.xlu2 %491  ;;  %1509 = vmatpush.msra.mxu3 %v1469_v62 }
  0xf2   : > { %952 = vmatmul.f32.gmra.mxu0 %v1598_v7  ;;  %v1600_v14 = vpop.eup %1599  ;;  %1096 = vmatpush.msra.mxu1 %v1468_v23  ;;  %v614_v45 = vmul.f32 %v1971_v12, %v492_v10 }
  0xf3   : > { %1601 = vtanh.f32 %v858_v8  ;;  %1510 = vmatpush.msra.mxu3 %v1468_v23  ;;  %v502_v8 = vpop.permute.xlu0 %501 }
  0xf4   : > { %1097 = vmatpush.msra.mxu1 %v1467_v25  ;;  %v649_v48 = vadd.f32 %v1992_v19, %v614_v45  ;;  %v616_v11 = vmul.f32 %v1971_v12, %v502_v8 }
  0xf5   : > { %1511 = vmatpush.msra.mxu3 %v1467_v25 }
  0xf6   : > { %1098 = vmatpush.msra.mxu1 %v1466_v27 }
  0xf7   : > { %v572_v16 = vpop.permute.xlu1 %571  ;;  %1512 = vmatpush.msra.mxu3 %v1466_v27 }
  0xf8   : > { %v630_v18 = vmul.f32 %v1971_v12, %v572_v16  ;;  %1099 = vmatpush.msra.mxu1 %v1465_v32 }
  0xf9   : > { %v1602_v21 = vpop.eup %1601  ;;  %v582_v26 = vpop.permute.xlu2 %581  ;;  %1513 = vmatpush.msra.mxu3 %v1465_v32 }
  0xfa   : > { %v665_v22 = vadd.f32 %v1992_v19, %v630_v18  ;;  %955 = vmatmul.f32.gmra.mxu0 %v1600_v14  ;;  %1006 = vmatmul.f32.gmra.mxu2 %v1602_v21  ;;  %v632_v41 = vmul.f32 %v1971_v12, %v582_v26  ;;  %v651_v18 = vadd.f32 %v1992_v19, %v616_v11 }
  0xfb   : > { %1100 = vmatpush.msra.mxu1 %v1464_v35  ;;  %1514 = vmatpush.msra.mxu3 %v1464_v35  ;;  %v723_v23 = vpop.permute.xlu0 %722 }
  0xfc   : > { %v859_v24 = vadd.f32 %v827_v17, %v665_v22  ;;  %v667_v3 = vadd.f32 %v1992_v19, %v632_v41  ;;  %v814_v30 = vmul.f32 %v1997_v20, %v723_v23 }
  0xfe   : > { %1603 = vtanh.f32 %v859_v24  ;;  %v861_v49 = vadd.f32 %v829_v44, %v667_v3 }
  0xff   : > { %v487_v28 = vpop.permute.xlu1 %486 }
 0x100   : > { %v613_v29 = vmul.f32 %v1971_v12, %v487_v28 }
 0x102   : > { %v648_v34 = vadd.f32 %v1992_v19, %v613_v29  ;;  %v715_v43 = vpop.permute.xlu2 %714 }
 0x103   : > { %v935_v37 = vpop.f32.mrf.mxu0  ;;  %v812_v58 = vmul.f32 %v1997_v20, %v715_v43 }
 0x104   : > { %v1604_v38 = vpop.eup %1603  ;;  %v842_v39 = vadd.f32 %v810_v33, %v648_v34  ;;  %v936_v40 = vadd.f32 %v2186_v31, %v935_v37 }
 0x105   : > { %1009 = vmatmul.f32.gmra.mxu2 %v1604_v38 }
 0x106   : > { %1605 = vtanh.f32 %v842_v39 }
 0x107   : > { %1607 = vtanh.f32 %v936_v40 }
 0x108   : > { %v779_v42 = vpop.permute.xlu1 %778 }
 0x109   : > { %v828_v15 = vmul.f32 %v1997_v20, %v779_v42 }
 0x10a   : > { %v787_v53 = vpop.permute.xlu2 %786 }
 0x10b   : > { %v860_v1 = vadd.f32 %v828_v15, %v666_v2  ;;  %v830_v9 = vmul.f32 %v1997_v20, %v787_v53 }
 0x10c   : > { %v1606_v46 = vpop.eup %1605 }
 0x10d   : > { %v1608_v47 = vpop.eup %1607  ;;  %1609 = vtanh.f32 %v860_v1  ;;  %958 = vmatmul.f32.gmra.mxu0 %v1606_v46 }
 0x10e   : > { %1101 = vmatmul.f32.vlgmr.msra.gmra.mxu1 %v1608_v47  ;;  %1611 = vtanh.f32 %v861_v49 }
 0x110   : > { %v711_v50 = vpop.permute.xlu1 %710 }
 0x111   : > { %v811_v52 = vmul.f32 %v1997_v20, %v711_v50 }
 0x113   : > { %v1610_v54 = vpop.eup %1609  ;;  %v843_v55 = vadd.f32 %v811_v52, %v649_v48  ;;  %v592_v61 = vpop.permute.xlu2 %591 }
 0x114   : > { %1012 = vmatmul.f32.gmra.mxu2 %v1610_v54  ;;  %v1612_v56 = vpop.eup %1611  ;;  %v634_v25 = vmul.f32 %v1971_v12, %v592_v61 }
 0x115   : > { %1613 = vtanh.f32 %v843_v55 }
 0x116   : > { %v669_v35 = vadd.f32 %v1992_v19, %v634_v25 }
 0x119   : > { %v497_v57 = vpop.permute.xlu1 %496 }
 0x11a   : > { %v615_v51 = vmul.f32 %v1971_v12, %v497_v57 }
 0x11b   : > { %v1614_v59 = vpop.eup %1613  ;;  %v507_v62 = vpop.permute.xlu2 %506 }
 0x11c   : > { %v650_v60 = vadd.f32 %v1992_v19, %v615_v51  ;;  %961 = vmatmul.f32.gmra.mxu0 %v1614_v59  ;;  %1015 = vmatmul.f32.gmra.mxu2 %v1612_v56  ;;  %v617_v21 = vmul.f32 %v1971_v12, %v507_v62  ;;  %v602_v51 = vpop.permute.xlu0 %601 }
 0x11e   : > { %v844_v63 = vadd.f32 %v812_v58, %v650_v60  ;;  %v652_v29 = vadd.f32 %v1992_v19, %v617_v21 }
 0x11f   : > { %v983_v0 = vpop.f32.mrf.mxu2 }
 0x120   : > { %1615 = vtanh.f32 %v844_v63  ;;  %v984_v4 = vadd.f32 %v2186_v31, %v983_v0  ;;  %v846_v37 = vadd.f32 %v814_v30, %v652_v29 }
 0x121   : > { %v587_v6 = vpop.permute.xlu1 %586 }
 0x122   : > { %v633_v7 = vmul.f32 %v1971_v12, %v587_v6  ;;  %1617 = vtanh.f32 %v984_v4  ;;  %v636_v4 = vmul.f32 %v1971_v12, %v602_v51  ;;  %v2264_v51 = vld [vmem:[%s2457_s7] ss:$0 sm:$0xff] }
 0x124   : > { %v668_v10 = vadd.f32 %v1992_v19, %v633_v7 }
 0x125   : > { %v795_v2 = vpop.permute.xlu2 %794 }
 0x126   : > { %v1616_v5 = vpop.eup %1615  ;;  %v862_v13 = vadd.f32 %v830_v9, %v668_v10  ;;  %v832_v47 = vmul.f32 %v1997_v20, %v795_v2  ;;  %v671_v9 = vadd.f32 %v1992_v19, %v636_v4 }
 0x127   : > { %964 = vmatmul.f32.gmra.mxu0 %v1616_v5  ;;  %v986_v14 = vpop.f32.mrf.mxu2 }
 0x128   : > { %1619 = vtanh.f32 %v862_v13  ;;  %v1618_v16 = vpop.eup %1617  ;;  %v987_v17 = vadd.f32 %v2186_v31, %v986_v14 }
 0x129   : > { %1149 = vmatmul.f32.vlgmr.msra.gmra.mxu3 %v1618_v16 }
 0x12a   : > { %v719_v22 = vpop.permute.xlu1 %718  ;;  %1621 = vtanh.f32 %v987_v17 }
 0x12b   : > { %v813_v24 = vmul.f32 %v1997_v20, %v719_v22 }
 0x12c   : > { %v938_v26 = vpop.f32.mrf.mxu0 }
 0x12d   : > { %v845_v27 = vadd.f32 %v813_v24, %v651_v18  ;;  %v939_v28 = vadd.f32 %v2186_v31, %v938_v26  ;;  %v727_v53 = vpop.permute.xlu2 %726 }
 0x12e   : > { %v1620_v32 = vpop.eup %1619  ;;  %v815_v60 = vmul.f32 %v1997_v20, %v727_v53 }
 0x12f   : > { %1623 = vtanh.f32 %v845_v27  ;;  %1018 = vmatmul.f32.gmra.mxu2 %v1620_v32  ;;  %v989_v33 = vpop.f32.mrf.mxu2  ;;  %v735_v27 = vpop.permute.xlu0 %734 }
 0x130   : > { %1625 = vtanh.f32 %v939_v28  ;;  %v1622_v34 = vpop.eup %1621  ;;  %v990_v36 = vadd.f32 %v2186_v31, %v989_v33  ;;  %v817_v33 = vmul.f32 %v1997_v20, %v735_v27 }
 0x131   : > { %1152 = vmatmul.f32.gmra.mxu3 %v1622_v34 }
 0x132   : > { %v791_v38 = vpop.permute.xlu1 %790  ;;  %1627 = vtanh.f32 %v990_v36 }
 0x133   : > { %v831_v39 = vmul.f32 %v1997_v20, %v791_v38  ;;  %1629 = vtanh.f32 %v846_v37 }
 0x134   : > { %v941_v40 = vpop.f32.mrf.mxu0 }
 0x135   : > { %v1624_v41 = vpop.eup %1623  ;;  %v863_v42 = vadd.f32 %v831_v39, %v669_v35  ;;  %v942_v43 = vadd.f32 %v2186_v31, %v941_v40 }
 0x136   : > { %v1626_v15 = vpop.eup %1625  ;;  %967 = vmatmul.f32.gmra.mxu0 %v1624_v41  ;;  %v517_v8 = vpop.permute.xlu2 %516 }
 0x137   : > { %1631 = vtanh.f32 %v863_v42  ;;  %1104 = vmatmul.f32.gmra.mxu1 %v1626_v15  ;;  %v619_v62 = vmul.f32 %v1971_v12, %v517_v8 }
 0x138   : > { %1633 = vtanh.f32 %v942_v43  ;;  %v1628_v44 = vpop.eup %1627 }
 0x139   : > { %v992_v45 = vpop.f32.mrf.mxu2  ;;  %1155 = vmatmul.f32.gmra.mxu3 %v1628_v44  ;;  %v1630_v3 = vpop.eup %1629  ;;  %v654_v18 = vadd.f32 %v1992_v19, %v619_v62 }
 0x13a   : > { %v993_v1 = vadd.f32 %v2186_v31, %v992_v45 }
 0x13b   : > { %v597_v46 = vpop.permute.xlu1 %596 }
 0x13c   : > { %1635 = vtanh.f32 %v993_v1  ;;  %v635_v48 = vmul.f32 %v1971_v12, %v597_v46 }
 0x13d   : > { %v1632_v49 = vpop.eup %1631 }
 0x13e   : > { %v1634_v50 = vpop.eup %1633  ;;  %v670_v52 = vadd.f32 %v1992_v19, %v635_v48  ;;  %970 = vmatmul.f32.gmra.mxu0 %v1630_v3  ;;  %1021 = vmatmul.f32.gmra.mxu2 %v1632_v49  ;;  %v522_v17 = vpop.permute.xlu2 %521 }
 0x13f   : > { %1107 = vmatmul.f32.gmra.mxu1 %v1634_v50  ;;  %v620_v24 = vmul.f32 %v1971_v12, %v522_v17 }
 0x140   : > { %v864_v54 = vadd.f32 %v832_v47, %v670_v52  ;;  %v2256_v52 = vld [vmem:[%s2456_s6 + $0x1] ss:$0 sm:$0xff] }
 0x141   : > { %v655_v32 = vadd.f32 %v1992_v19, %v620_v24 }
 0x142   : > { %v1636_v55 = vpop.eup %1635  ;;  %1637 = vtanh.f32 %v864_v54 }
 0x143   : > { %v512_v56 = vpop.permute.xlu1 %511  ;;  %1158 = vmatmul.f32.gmra.mxu3 %v1636_v55  ;;  %v849_v36 = vadd.f32 %v817_v33, %v655_v32 }
 0x144   : > { %v618_v57 = vmul.f32 %v1971_v12, %v512_v56  ;;  %v995_v58 = vpop.f32.mrf.mxu2 }
 0x145   : > { %v996_v59 = vadd.f32 %v2186_v31, %v995_v58 }
 0x146   : > { %v653_v61 = vadd.f32 %v1992_v19, %v618_v57  ;;  %v944_v63 = vpop.f32.mrf.mxu0 }
 0x147   : > { %1639 = vtanh.f32 %v996_v59  ;;  %v945_v0 = vadd.f32 %v2186_v31, %v944_v63 }
 0x148   : > { %v1638_v6 = vpop.eup %1637  ;;  %v847_v7 = vadd.f32 %v815_v60, %v653_v61 }
 0x149   : > { %1641 = vtanh.f32 %v945_v0  ;;  %1024 = vmatmul.f32.gmra.mxu2 %v1638_v6 }
 0x14a   : > { %1643 = vtanh.f32 %v847_v7 }
 0x14c   : > { %v799_v10 = vpop.permute.xlu1 %798 }
 0x14d   : > { %v1640_v11 = vpop.eup %1639  ;;  %v833_v5 = vmul.f32 %v1997_v20, %v799_v10 }
 0x14e   : > { %1161 = vmatmul.f32.gmra.mxu3 %v1640_v11 }
 0x14f   : > { %v1642_v13 = vpop.eup %1641  ;;  %v865_v14 = vadd.f32 %v833_v5, %v671_v9 }
 0x150   : > { %v1644_v16 = vpop.eup %1643  ;;  %1110 = vmatmul.f32.gmra.mxu1 %v1642_v13 }
 0x151   : > { %1645 = vtanh.f32 %v865_v14  ;;  %973 = vmatmul.f32.gmra.mxu0 %v1644_v16 }
 0x153   : > { %v998_v21 = vpop.f32.mrf.mxu2 }
 0x154   : > { %v999_v22 = vadd.f32 %v2186_v31, %v998_v21  ;;  %v731_v23 = vpop.permute.xlu1 %730 }
 0x155   : > { %v816_v25 = vmul.f32 %v1997_v20, %v731_v23  ;;  %v947_v26 = vpop.f32.mrf.mxu0 }
 0x156   : > { %1647 = vtanh.f32 %v999_v22  ;;  %v948_v28 = vadd.f32 %v2186_v31, %v947_v26 }
 0x157   : > { %v1646_v29 = vpop.eup %1645  ;;  %v848_v30 = vadd.f32 %v816_v25, %v654_v18 }
 0x158   : > { %1649 = vtanh.f32 %v948_v28  ;;  %1027 = vmatmul.f32.gmra.mxu2 %v1646_v29 }
 0x159   : > { %1651 = vtanh.f32 %v848_v30 }
 0x15b   : > { %v1001_v34 = vpop.f32.mrf.mxu2 }
 0x15c   : > { %v1648_v35 = vpop.eup %1647  ;;  %v1002_v12 = vadd.f32 %v2186_v31, %v1001_v34 }
 0x15d   : > { %1164 = vmatmul.f32.gmra.mxu3 %v1648_v35 }
 0x15e   : > { %v1650_v37 = vpop.eup %1649  ;;  %1653 = vtanh.f32 %v1002_v12 }
 0x15f   : > { %v1652_v38 = vpop.eup %1651  ;;  %1113 = vmatmul.f32.gmra.mxu1 %v1650_v37  ;;  %1655 = vtanh.f32 %v849_v36 }
 0x160   : > { %v950_v39 = vpop.f32.mrf.mxu0  ;;  %976 = vmatmul.f32.gmra.mxu0 %v1652_v38 }
 0x161   : > { %v951_v40 = vadd.f32 %v2186_v31, %v950_v39 }
 0x163   : > { %1657 = vtanh.f32 %v951_v40 }
 0x164   : > { %v1654_v19 = vpop.eup %1653 }
 0x165   : > { %1167 = vmatmul.f32.gmra.mxu3 %v1654_v19  ;;  %v1656_v20 = vpop.eup %1655 }
 0x168   : > { %979 = vmatmul.f32.gmra.mxu0 %v1656_v20 }
 0x169   : > { %v1658_v2 = vpop.eup %1657 }
 0x16a   : > { %1116 = vmatmul.f32.gmra.mxu1 %v1658_v2 }
 0x16e   : > { %v1004_v41 = vpop.f32.mrf.mxu2 }
 0x16f   : > { %v1005_v42 = vadd.f32 %v2186_v31, %v1004_v41  ;;  %v953_v43 = vpop.f32.mrf.mxu0 }
 0x170   : > { %v954_v15 = vadd.f32 %v2186_v31, %v953_v43 }
 0x171   : > { %1659 = vtanh.f32 %v1005_v42 }
 0x172   : > { %1661 = vtanh.f32 %v954_v15 }
 0x177   : > { %v1660_v44 = vpop.eup %1659  ;;  %v956_v45 = vpop.f32.mrf.mxu0 }
 0x178   : > { %v1662_v1 = vpop.eup %1661  ;;  %v957_v3 = vadd.f32 %v2186_v31, %v956_v45  ;;  %1170 = vmatmul.f32.gmra.mxu3 %v1660_v44 }
 0x179   : > { %1119 = vmatmul.f32.gmra.mxu1 %v1662_v1 }
 0x17a   : > { %1663 = vtanh.f32 %v957_v3 }
 0x17d   : > { %v1007_v46 = vpop.f32.mrf.mxu2 }
 0x17e   : > { %v1008_v47 = vadd.f32 %v2186_v31, %v1007_v46 }
 0x180   : > { %v1664_v48 = vpop.eup %1663  ;;  %1665 = vtanh.f32 %v1008_v47 }
 0x181   : > { %1122 = vmatmul.f32.gmra.mxu1 %v1664_v48 }
 0x186   : > { %v1666_v49 = vpop.eup %1665 }
 0x187   : > { %1173 = vmatmul.f32.gmra.mxu3 %v1666_v49 }
 0x188   : > { %v1010_v50 = vpop.f32.mrf.mxu2 }
 0x189   : > { %v1011_v53 = vadd.f32 %v2186_v31, %v1010_v50 }
 0x18a   : > { %v959_v54 = vpop.f32.mrf.mxu0 }
 0x18b   : > { %1667 = vtanh.f32 %v1011_v53  ;;  %v960_v55 = vadd.f32 %v2186_v31, %v959_v54  ;;  %v1102_v56 = vpop.f32.mrf.mxu1 }
 0x18c   : > { %v1103_v57 = vadd.f32 %v2256_v52, %v1102_v56 }
 0x18d   : > { %1669 = vtanh.f32 %v960_v55 }
 0x18e   : > { %1671 = vtanh.f32 %v1103_v57 }
 0x191   : > { %v1668_v58 = vpop.eup %1667 }
 0x192   : > { %1176 = vmatmul.f32.gmra.mxu3 %v1668_v58 }
 0x193   : > { %v1670_v59 = vpop.eup %1669 }
 0x194   : > { %v1672_v60 = vpop.eup %1671  ;;  %1125 = vmatmul.f32.gmra.mxu1 %v1670_v59 }
 0x195   : > { %v1234_v61 = vmul.f32 %v1672_v60, %v2264_v51 }
 0x197   : > { %v1013_v63 = vpop.f32.mrf.mxu2  ;;  %1266 = vadd.xlane.f32.xlu1 %v1234_v61 }
 0x198   : > { %v1014_v0 = vadd.f32 %v2186_v31, %v1013_v63 }
 0x199   : > { %v962_v4 = vpop.f32.mrf.mxu0 }
 0x19a   : > { %1673 = vtanh.f32 %v1014_v0  ;;  %v963_v6 = vadd.f32 %v2186_v31, %v962_v4 }
 0x19c   : > { %1675 = vtanh.f32 %v963_v6 }
 0x19f   : > { %v1016_v7 = vpop.f32.mrf.mxu2 }
 0x1a0   : > { %v1674_v8 = vpop.eup %1673  ;;  %v1017_v9 = vadd.f32 %v2186_v31, %v1016_v7 }
 0x1a1   : > { %1179 = vmatmul.f32.gmra.mxu3 %v1674_v8 }
 0x1a2   : > { %v1676_v10 = vpop.eup %1675  ;;  %1677 = vtanh.f32 %v1017_v9 }
 0x1a3   : > { %1128 = vmatmul.f32.gmra.mxu1 %v1676_v10 }
 0x1a4   : > { %v965_v11 = vpop.f32.mrf.mxu0 }
 0x1a5   : > { %v966_v5 = vadd.f32 %v2186_v31, %v965_v11 }
 0x1a7   : > { %1679 = vtanh.f32 %v966_v5 }
 0x1a8   : > { %v1678_v13 = vpop.eup %1677 }
 0x1a9   : > { %1182 = vmatmul.f32.gmra.mxu3 %v1678_v13 }
 0x1ac   : > { %v1150_v14 = vpop.f32.mrf.mxu3 }
 0x1ad   : > { %v1680_v62 = vpop.eup %1679  ;;  %v1151_v25 = vadd.f32 %v2256_v52, %v1150_v14 }
 0x1ae   : > { %1131 = vmatmul.f32.gmra.mxu1 %v1680_v62 }
 0x1b2   : > { %v1019_v16 = vpop.f32.mrf.mxu2 }
 0x1b3   : > { %v1020_v17 = vadd.f32 %v2186_v31, %v1019_v16  ;;  %v968_v18 = vpop.f32.mrf.mxu0 }
 0x1b4   : > { %v969_v21 = vadd.f32 %v2186_v31, %v968_v18  ;;  %v1105_v22 = vpop.f32.mrf.mxu1  ;;  %v1153_v24 = vpop.f32.mrf.mxu3 }
 0x1b5   : > { %1681 = vtanh.f32 %v1020_v17  ;;  %v1106_v23 = vadd.f32 %v2256_v52, %v1105_v22  ;;  %v1154_v37 = vadd.f32 %v2256_v52, %v1153_v24 }
 0x1b6   : > { %1683 = vtanh.f32 %v969_v21 }
 0x1b7   : > { %1685 = vtanh.f32 %v1106_v23 }
 0x1b8   : > { %1687 = vtanh.f32 %v1151_v25 }
 0x1bb   : > { %v1682_v26 = vpop.eup %1681  ;;  %v971_v27 = vpop.f32.mrf.mxu0 }
 0x1bc   : > { %v1684_v28 = vpop.eup %1683  ;;  %v972_v29 = vadd.f32 %v2186_v31, %v971_v27  ;;  %v1108_v30 = vpop.f32.mrf.mxu1  ;;  %1185 = vmatmul.f32.gmra.mxu3 %v1682_v26 }
 0x1bd   : > { %v1686_v32 = vpop.eup %1685  ;;  %v1109_v33 = vadd.f32 %v2256_v52, %v1108_v30  ;;  %v1156_v34 = vpop.f32.mrf.mxu3  ;;  %1134 = vmatmul.f32.gmra.mxu1 %v1684_v28 }
 0x1be   : > { %1689 = vtanh.f32 %v972_v29  ;;  %v1157_v35 = vadd.f32 %v2256_v52, %v1156_v34  ;;  %v1235_v12 = vmul.f32 %v1686_v32, %v2264_v51  ;;  %v1688_v36 = vpop.eup %1687 }
 0x1bf   : > { %1691 = vtanh.f32 %v1109_v33  ;;  %v1250_v19 = vmul.f32 %v1688_v36, %v2264_v51 }
 0x1c0   : > { %1693 = vtanh.f32 %v1157_v35  ;;  %1268 = vadd.xlane.f32.xlu2 %v1235_v12  ;;  %v2305_v35 = vld [vmem:[#allocation2] ss:$0 sm:$0xff] }
 0x1c1   : > { %v1022_v38 = vpop.f32.mrf.mxu2 }
 0x1c2   : > { %v1023_v39 = vadd.f32 %v2186_v31, %v1022_v38 }
 0x1c4   : > { %v1690_v40 = vpop.eup %1689  ;;  %1695 = vtanh.f32 %v1023_v39 }
 0x1c5   : > { %v1692_v20 = vpop.eup %1691  ;;  %1697 = vtanh.f32 %v1154_v37  ;;  %1137 = vmatmul.f32.gmra.mxu1 %v1690_v40 }
 0x1c6   : > { %v1694_v2 = vpop.eup %1693  ;;  %v1236_v41 = vmul.f32 %v1692_v20, %v2264_v51  ;;  %v1159_v43 = vpop.f32.mrf.mxu3 }
 0x1c7   : > { %v1252_v42 = vmul.f32 %v1694_v2, %v2264_v51  ;;  %v1160_v53 = vadd.f32 %v2256_v52, %v1159_v43 }
 0x1c8   : > { %1270 = vadd.xlane.f32.xlu0 %v1236_v41  ;;  %1298 = vadd.xlane.f32.xlu2 %v1250_v19 }
 0x1c9   : > { %1302 = vadd.xlane.f32.xlu1 %v1252_v42 }
 0x1ca   : > { %v1696_v15 = vpop.eup %1695 }
 0x1cb   : > { %v1698_v44 = vpop.eup %1697  ;;  %1188 = vmatmul.f32.gmra.mxu3 %v1696_v15 }
 0x1cc   : > { %v1025_v45 = vpop.f32.mrf.mxu2  ;;  %v1251_v48 = vmul.f32 %v1698_v44, %v2264_v51 }
 0x1cd   : > { %v1026_v1 = vadd.f32 %v2186_v31, %v1025_v45  ;;  %v1111_v3 = vpop.f32.mrf.mxu1 }
 0x1ce   : > { %v1112_v46 = vadd.f32 %v2256_v52, %v1111_v3  ;;  %v974_v47 = vpop.f32.mrf.mxu0 }
 0x1cf   : > { %1699 = vtanh.f32 %v1026_v1  ;;  %v975_v49 = vadd.f32 %v2186_v31, %v974_v47 }
 0x1d0   : > { %1701 = vtanh.f32 %v1112_v46  ;;  %1300 = vadd.xlane.f32.xlu0 %v1251_v48 }
 0x1d1   : > { %1703 = vtanh.f32 %v975_v49  ;;  %v1162_v50 = vpop.f32.mrf.mxu3 }
 0x1d2   : > { %v1163_v54 = vadd.f32 %v2256_v52, %v1162_v50 }
 0x1d4   : > { %1705 = vtanh.f32 %v1163_v54 }
 0x1d5   : > { %v1700_v55 = vpop.eup %1699  ;;  %1707 = vtanh.f32 %v1160_v53 }
 0x1d6   : > { %v1702_v56 = vpop.eup %1701  ;;  %1191 = vmatmul.f32.gmra.mxu3 %v1700_v55 }
 0x1d7   : > { %v1704_v57 = vpop.eup %1703  ;;  %v1237_v58 = vmul.f32 %v1702_v56, %v2264_v51 }
 0x1d8   : > { %1140 = vmatmul.f32.gmra.mxu1 %v1704_v57 }
 0x1d9   : > { %1272 = vadd.xlane.f32.xlu2 %v1237_v58 }
 0x1da   : > { %v1706_v59 = vpop.eup %1705 }
 0x1db   : > { %v1028_v60 = vpop.f32.mrf.mxu2  ;;  %v1254_v61 = vmul.f32 %v1706_v59, %v2264_v51  ;;  %v1708_v63 = vpop.eup %1707 }
 0x1dc   : > { %v1029_v0 = vadd.f32 %v2186_v31, %v1028_v60  ;;  %v1114_v4 = vpop.f32.mrf.mxu1  ;;  %v1253_v9 = vmul.f32 %v1708_v63, %v2264_v51 }
 0x1dd   : > { %v1115_v6 = vadd.f32 %v2256_v52, %v1114_v4  ;;  %1306 = vadd.xlane.f32.xlu0 %v1254_v61  ;;  %v977_v7 = vpop.f32.mrf.mxu0 }
 0x1de   : > { %1709 = vtanh.f32 %v1029_v0  ;;  %v978_v8 = vadd.f32 %v2186_v31, %v977_v7 }
 0x1df   : > { %1711 = vtanh.f32 %v1115_v6 }
 0x1e0   : > { %1713 = vtanh.f32 %v978_v8  ;;  %v1165_v23 = vpop.f32.mrf.mxu3 }
 0x1e1   : > { %1304 = vadd.xlane.f32.xlu2 %v1253_v9 }
 0x1e4   : > { %v1710_v10 = vpop.eup %1709 }
 0x1e5   : > { %v1712_v11 = vpop.eup %1711  ;;  %v980_v5 = vpop.f32.mrf.mxu0  ;;  %1194 = vmatmul.f32.gmra.mxu3 %v1710_v10 }
 0x1e6   : > { %v1714_v13 = vpop.eup %1713  ;;  %v981_v62 = vadd.f32 %v2186_v31, %v980_v5  ;;  %v1238_v14 = vmul.f32 %v1712_v11, %v2264_v51  ;;  %v1166_v31 = vadd.f32 %v2256_v52, %v1165_v23 }
 0x1e7   : > { %v1117_v16 = vpop.f32.mrf.mxu1  ;;  %1143 = vmatmul.f32.gmra.mxu1 %v1714_v13 }
 0x1e8   : > { %1715 = vtanh.f32 %v981_v62  ;;  %v1118_v17 = vadd.f32 %v2256_v52, %v1117_v16  ;;  %1274 = vadd.xlane.f32.xlu1 %v1238_v14  ;;  %v1168_v29 = vpop.f32.mrf.mxu3 }
 0x1e9   : > { %v1169_v32 = vadd.f32 %v2256_v52, %v1168_v29 }
 0x1ea   : > { %1717 = vtanh.f32 %v1118_v17 }
 0x1ee   : > { %v1716_v18 = vpop.eup %1715 }
 0x1ef   : > { %1146 = vmatmul.f32.gmra.mxu1 %v1716_v18 }
 0x1f0   : > { %v1718_v21 = vpop.eup %1717 }
 0x1f1   : > { %v1239_v22 = vmul.f32 %v1718_v21, %v2264_v51 }
 0x1f3   : > { %1276 = vadd.xlane.f32.xlu2 %v1239_v22 }
 0x1f6   : > { %v1120_v24 = vpop.f32.mrf.mxu1 }
 0x1f7   : > { %v1121_v25 = vadd.f32 %v2256_v52, %v1120_v24 }
 0x1f9   : > { %1719 = vtanh.f32 %v1121_v25 }
 0x1fa   : > { %1721 = vtanh.f32 %v1166_v31 }
 0x1fb   : > { %v1171_v2 = vpop.f32.mrf.mxu3 }
 0x1fc   : > { %v1172_v41 = vadd.f32 %v2256_v52, %v1171_v2 }
 0x1fe   : > { %v1123_v26 = vpop.f32.mrf.mxu1 }
 0x1ff   : > { %v1720_v27 = vpop.eup %1719  ;;  %v1124_v28 = vadd.f32 %v2256_v52, %v1123_v26 }
 0x200   : > { %v1240_v30 = vmul.f32 %v1720_v27, %v2264_v51  ;;  %v1722_v33 = vpop.eup %1721 }
 0x201   : > { %1723 = vtanh.f32 %v1124_v28  ;;  %v1255_v12 = vmul.f32 %v1722_v33, %v2264_v51 }
 0x202   : > { %1278 = vadd.xlane.f32.xlu1 %v1240_v30  ;;  %1725 = vtanh.f32 %v1169_v32 }
 0x207   : > { %v1724_v34 = vpop.eup %1723 }
 0x208   : > { %v1241_v36 = vmul.f32 %v1724_v34, %v2264_v51  ;;  %v1726_v39 = vpop.eup %1725 }
 0x209   : > { %v1256_v40 = vmul.f32 %v1726_v39, %v2264_v51 }
 0x20a   : > { %1308 = vadd.xlane.f32.xlu1 %v1255_v12  ;;  %1280 = vadd.xlane.f32.xlu2 %v1241_v36  ;;  %v1267_v37 = vpop.xlane.xlu1 %1266  ;;  %v1174_v1 = vpop.f32.mrf.mxu3 }
 0x20b   : > { %v1334_v38 = vadd.f32 %v2305_v35, %v1267_v37  ;;  %v1175_v46 = vadd.f32 %v2256_v52, %v1174_v1 }
 0x20d   : > { %1367 = vst.msk [vmem:[%s2314_s24] sm:$0xff] %vm1366_vm0, %v1334_v38 }
 0x211   : > { %v1126_v19 = vpop.f32.mrf.mxu1 }
 0x212   : > { %v1127_v20 = vadd.f32 %v2256_v52, %v1126_v19  ;;  %1310 = vadd.xlane.f32.xlu2 %v1256_v40 }
 0x214   : > { %1727 = vtanh.f32 %v1127_v20 }
 0x215   : > { %1729 = vtanh.f32 %v1172_v41  ;;  %v1177_v53 = vpop.f32.mrf.mxu3 }
 0x216   : > { %v1178_v55 = vadd.f32 %v2256_v52, %v1177_v53 }
 0x21a   : > { %v1728_v42 = vpop.eup %1727 }
 0x21b   : > { %v1242_v43 = vmul.f32 %v1728_v42, %v2264_v51  ;;  %v1730_v15 = vpop.eup %1729 }
 0x21c   : > { %v1257_v3 = vmul.f32 %v1730_v15, %v2264_v51 }
 0x21d   : > { %1282 = vadd.xlane.f32.xlu0 %v1242_v43 }
 0x220   : > { %v1129_v44 = vpop.f32.mrf.mxu1 }
 0x221   : > { %v1130_v45 = vadd.f32 %v2256_v52, %v1129_v44 }
 0x223   : > { %1731 = vtanh.f32 %v1130_v45 }
 0x224   : > { %1733 = vtanh.f32 %v1175_v46  ;;  %v1180_v63 = vpop.f32.mrf.mxu3 }
 0x225   : > { %1312 = vadd.xlane.f32.xlu0 %v1257_v3  ;;  %v1181_v13 = vadd.f32 %v2256_v52, %v1180_v63 }
 0x229   : > { %v1732_v47 = vpop.eup %1731 }
 0x22a   : > { %v1243_v48 = vmul.f32 %v1732_v47, %v2264_v51  ;;  %v1734_v54 = vpop.eup %1733 }
 0x22b   : > { %v1132_v49 = vpop.f32.mrf.mxu1  ;;  %v1258_v56 = vmul.f32 %v1734_v54, %v2264_v51 }
 0x22c   : > { %v1133_v50 = vadd.f32 %v2256_v52, %v1132_v49  ;;  %1284 = vadd.xlane.f32.xlu1 %v1243_v48  ;;  %v1183_v18 = vpop.f32.mrf.mxu3 }
 0x22d   : > { %v1184_v23 = vadd.f32 %v2256_v52, %v1183_v18 }
 0x22e   : > { %1735 = vtanh.f32 %v1133_v50 }
 0x22f   : > { %1737 = vtanh.f32 %v1178_v55 }
 0x233   : > { %v1269_v57 = vpop.xlane.xlu2 %1268 }
 0x234   : > { %v1736_v58 = vpop.eup %1735  ;;  %v1335_v59 = vadd.f32 %v2305_v35, %v1269_v57  ;;  %1314 = vadd.xlane.f32.xlu1 %v1258_v56 }
 0x235   : > { %v1244_v60 = vmul.f32 %v1736_v58, %v2264_v51  ;;  %v1738_v61 = vpop.eup %1737 }
 0x236   : > { %1368 = vst.msk [vmem:[%s2314_s24 + $0x8] sm:$0xff] %vm1366_vm0, %v1335_v59  ;;  %v1259_v5 = vmul.f32 %v1738_v61, %v2264_v51 }
 0x237   : > { %1286 = vadd.xlane.f32.xlu2 %v1244_v60 }
 0x23a   : > { %v1135_v0 = vpop.f32.mrf.mxu1 }
 0x23b   : > { %v1271_v4 = vpop.xlane.xlu0 %1270  ;;  %v1136_v6 = vadd.f32 %v2256_v52, %v1135_v0  ;;  %v1299_v7 = vpop.xlane.xlu2 %1298 }
 0x23c   : > { %v1336_v8 = vadd.f32 %v2305_v35, %v1271_v4  ;;  %v1303_v9 = vpop.xlane.xlu1 %1302  ;;  %v1350_v10 = vadd.f32 %v2305_v35, %v1299_v7 }
 0x23d   : > { %1739 = vtanh.f32 %v1136_v6  ;;  %v1352_v11 = vadd.f32 %v2305_v35, %v1303_v9 }
 0x23e   : > { %1369 = vst.msk [vmem:[%s2314_s24 + $0x10] sm:$0xff] %vm1366_vm0, %v1336_v8  ;;  %1741 = vtanh.f32 %v1181_v13 }
 0x23f   : > { %1385 = vst.msk [vmem:[%s2314_s24 + $0x90] sm:$0xff] %vm1366_vm0, %v1352_v11  ;;  %1316 = vadd.xlane.f32.xlu2 %v1259_v5  ;;  %v1186_v29 = vpop.f32.mrf.mxu3 }
 0x240   : > { %1383 = vst.msk [vmem:[%s2314_s24 + $0x80] sm:$0xff] %vm1366_vm0, %v1350_v10  ;;  %v1187_v40 = vadd.f32 %v2256_v52, %v1186_v29 }
 0x242   : > { %v1138_v62 = vpop.f32.mrf.mxu1 }
 0x243   : > { %v1740_v14 = vpop.eup %1739  ;;  %v1301_v16 = vpop.xlane.xlu0 %1300  ;;  %v1139_v17 = vadd.f32 %v2256_v52, %v1138_v62 }
 0x244   : > { %v1351_v21 = vadd.f32 %v2305_v35, %v1301_v16  ;;  %v1245_v22 = vmul.f32 %v1740_v14, %v2264_v51  ;;  %v1742_v24 = vpop.eup %1741 }
 0x245   : > { %1743 = vtanh.f32 %v1139_v17  ;;  %v1260_v26 = vmul.f32 %v1742_v24, %v2264_v51 }
 0x246   : > { %1384 = vst.msk [vmem:[%s2314_s24 + $0x88] sm:$0xff] %vm1366_vm0, %v1351_v21  ;;  %1288 = vadd.xlane.f32.xlu0 %v1245_v22  ;;  %1745 = vtanh.f32 %v1184_v23 }
 0x24b   : > { %v1744_v25 = vpop.eup %1743 }
 0x24c   : > { %v1273_v31 = vpop.xlane.xlu2 %1272  ;;  %v1246_v27 = vmul.f32 %v1744_v25, %v2264_v51  ;;  %v1746_v32 = vpop.eup %1745 }
 0x24d   : > { %v1337_v28 = vadd.f32 %v2305_v35, %v1273_v31  ;;  %v1261_v12 = vmul.f32 %v1746_v32, %v2264_v51 }
 0x24e   : > { %1318 = vadd.xlane.f32.xlu0 %v1260_v26  ;;  %1290 = vadd.xlane.f32.xlu1 %v1246_v27  ;;  %v1189_v39 = vpop.f32.mrf.mxu3 }
 0x24f   : > { %1370 = vst.msk [vmem:[%s2314_s24 + $0x18] sm:$0xff] %vm1366_vm0, %v1337_v28  ;;  %v1190_v47 = vadd.f32 %v2256_v52, %v1189_v39 }
 0x250   : > { %v1307_v30 = vpop.xlane.xlu0 %1306 }
 0x251   : > { %v1354_v33 = vadd.f32 %v2305_v35, %v1307_v30 }
 0x253   : > { %1387 = vst.msk [vmem:[%s2314_s24 + $0xa0] sm:$0xff] %vm1366_vm0, %v1354_v33 }
 0x254   : > { %v1305_v34 = vpop.xlane.xlu2 %1304 }
 0x255   : > { %v1353_v36 = vadd.f32 %v2305_v35, %v1305_v34  ;;  %v1141_v37 = vpop.f32.mrf.mxu1 }
 0x256   : > { %v1142_v38 = vadd.f32 %v2256_v52, %v1141_v37  ;;  %1320 = vadd.xlane.f32.xlu1 %v1261_v12 }
 0x257   : > { %1386 = vst.msk [vmem:[%s2314_s24 + $0x98] sm:$0xff] %vm1366_vm0, %v1353_v36 }
 0x258   : > { %1747 = vtanh.f32 %v1142_v38 }
 0x259   : > { %1749 = vtanh.f32 %v1187_v40  ;;  %v1192_v42 = vpop.f32.mrf.mxu3 }
 0x25a   : > { %v1193_v56 = vadd.f32 %v2256_v52, %v1192_v42 }
 0x25b   : > { %v1275_v19 = vpop.xlane.xlu1 %1274 }
 0x25c   : > { %v1338_v20 = vadd.f32 %v2305_v35, %v1275_v19 }
 0x25e   : > { %v1748_v2 = vpop.eup %1747  ;;  %1371 = vst.msk [vmem:[%s2314_s24 + $0x20] sm:$0xff] %vm1366_vm0, %v1338_v20 }
 0x25f   : > { %v1247_v41 = vmul.f32 %v1748_v2, %v2264_v51  ;;  %v1750_v43 = vpop.eup %1749 }
 0x260   : > { %v1262_v3 = vmul.f32 %v1750_v43, %v2264_v51 }
 0x261   : > { %1292 = vadd.xlane.f32.xlu2 %v1247_v41 }
 0x264   : > { %v1144_v15 = vpop.f32.mrf.mxu1 }
 0x265   : > { %v1145_v44 = vadd.f32 %v2256_v52, %v1144_v15 }
 0x266   : > { %v1277_v45 = vpop.xlane.xlu2 %1276 }
 0x267   : > { %1751 = vtanh.f32 %v1145_v44  ;;  %v1339_v1 = vadd.f32 %v2305_v35, %v1277_v45 }
 0x268   : > { %v1195_v46 = vpop.f32.mrf.mxu3 }
 0x269   : > { %1372 = vst.msk [vmem:[%s2314_s24 + $0x28] sm:$0xff] %vm1366_vm0, %v1339_v1  ;;  %v1196_v48 = vadd.f32 %v2256_v52, %v1195_v46  ;;  %1322 = vadd.xlane.f32.xlu2 %v1262_v3 }
 0x26b   : > { %1753 = vtanh.f32 %v1196_v48 }
 0x26c   : > { %v1147_v49 = vpop.f32.mrf.mxu1  ;;  %1755 = vtanh.f32 %v1190_v47 }
 0x26d   : > { %v1752_v50 = vpop.eup %1751  ;;  %v1148_v53 = vadd.f32 %v2256_v52, %v1147_v49 }
 0x26e   : > { %v1248_v54 = vmul.f32 %v1752_v50, %v2264_v51 }
 0x26f   : > { %1757 = vtanh.f32 %v1148_v53 }
 0x270   : > { %1294 = vadd.xlane.f32.xlu0 %v1248_v54  ;;  %1759 = vtanh.f32 %v1193_v56 }
 0x271   : > { %v1754_v55 = vpop.eup %1753 }
 0x272   : > { %v1265_v57 = vmul.f32 %v1754_v55, %v2264_v51  ;;  %v1756_v58 = vpop.eup %1755 }
 0x273   : > { %v1263_v63 = vmul.f32 %v1756_v58, %v2264_v51 }
 0x274   : > { %1328 = vadd.xlane.f32.xlu2 %v1265_v57 }
 0x275   : > { %v1758_v59 = vpop.eup %1757  ;;  %v1279_v60 = vpop.xlane.xlu1 %1278 }
 0x276   : > { %v1340_v61 = vadd.f32 %v2305_v35, %v1279_v60  ;;  %v1249_v0 = vmul.f32 %v1758_v59, %v2264_v51  ;;  %v1760_v52 = vpop.eup %1759 }
 0x277   : > { %v1264_v9 = vmul.f32 %v1760_v52, %v2264_v51 }
 0x278   : > { %1373 = vst.msk [vmem:[%s2314_s24 + $0x30] sm:$0xff] %vm1366_vm0, %v1340_v61  ;;  %1324 = vadd.xlane.f32.xlu0 %v1263_v63  ;;  %1296 = vadd.xlane.f32.xlu1 %v1249_v0 }
 0x27d   : > { %v1309_v4 = vpop.xlane.xlu1 %1308  ;;  %v1281_v6 = vpop.xlane.xlu2 %1280 }
 0x27e   : > { %v1355_v7 = vadd.f32 %v2305_v35, %v1309_v4  ;;  %v1341_v8 = vadd.f32 %v2305_v35, %v1281_v6 }
 0x280   : > { %1388 = vst.msk [vmem:[%s2314_s24 + $0xa8] sm:$0xff] %vm1366_vm0, %v1355_v7  ;;  %1326 = vadd.xlane.f32.xlu1 %v1264_v9 }
 0x281   : > { %1374 = vst.msk [vmem:[%s2314_s24 + $0x38] sm:$0xff] %vm1366_vm0, %v1341_v8 }
 0x285   : > { %v1311_v10 = vpop.xlane.xlu2 %1310 }
 0x286   : > { %v1356_v11 = vadd.f32 %v2305_v35, %v1311_v10 }
 0x288   : > { %1389 = vst.msk [vmem:[%s2314_s24 + $0xb0] sm:$0xff] %vm1366_vm0, %v1356_v11 }
 0x290   : > { %v1283_v5 = vpop.xlane.xlu0 %1282 }
 0x291   : > { %v1342_v13 = vadd.f32 %v2305_v35, %v1283_v5 }
 0x293   : > { %1375 = vst.msk [vmem:[%s2314_s24 + $0x40] sm:$0xff] %vm1366_vm0, %v1342_v13 }
 0x298   : > { %v1313_v62 = vpop.xlane.xlu0 %1312 }
 0x299   : > { %v1357_v51 = vadd.f32 %v2305_v35, %v1313_v62 }
 0x29b   : > { %1390 = vst.msk [vmem:[%s2314_s24 + $0xb8] sm:$0xff] %vm1366_vm0, %v1357_v51 }
 0x29f   : > { %v1285_v14 = vpop.xlane.xlu1 %1284 }
 0x2a0   : > { %v1343_v16 = vadd.f32 %v2305_v35, %v1285_v14 }
 0x2a2   : > { %1376 = vst.msk [vmem:[%s2314_s24 + $0x48] sm:$0xff] %vm1366_vm0, %v1343_v16 }
 0x2a7   : > { %v1315_v17 = vpop.xlane.xlu1 %1314 }
 0x2a8   : > { %v1358_v18 = vadd.f32 %v2305_v35, %v1315_v17 }
 0x2aa   : > { %1391 = vst.msk [vmem:[%s2314_s24 + $0xc0] sm:$0xff] %vm1366_vm0, %v1358_v18  ;;  %v1287_v21 = vpop.xlane.xlu2 %1286 }
 0x2ab   : > { %v1344_v22 = vadd.f32 %v2305_v35, %v1287_v21 }
 0x2ad   : > { %1377 = vst.msk [vmem:[%s2314_s24 + $0x50] sm:$0xff] %vm1366_vm0, %v1344_v22 }
 0x2b2   : > { %v1317_v23 = vpop.xlane.xlu2 %1316 }
 0x2b3   : > { %v1359_v24 = vadd.f32 %v2305_v35, %v1317_v23 }
 0x2b5   : > { %1392 = vst.msk [vmem:[%s2314_s24 + $0xc8] sm:$0xff] %vm1366_vm0, %v1359_v24 }
 0x2b9   : > { %v1289_v25 = vpop.xlane.xlu0 %1288 }
 0x2ba   : > { %v1345_v31 = vadd.f32 %v2305_v35, %v1289_v25 }
 0x2bc   : > { %1378 = vst.msk [vmem:[%s2314_s24 + $0x58] sm:$0xff] %vm1366_vm0, %v1345_v31 }
 0x2c1   : > { %v1319_v26 = vpop.xlane.xlu0 %1318  ;;  %v1291_v27 = vpop.xlane.xlu1 %1290 }
 0x2c2   : > { %v1360_v28 = vadd.f32 %v2305_v35, %v1319_v26  ;;  %v1346_v29 = vadd.f32 %v2305_v35, %v1291_v27 }
 0x2c4   : > { %1393 = vst.msk [vmem:[%s2314_s24 + $0xd0] sm:$0xff] %vm1366_vm0, %v1360_v28 }
 0x2c5   : > { %1379 = vst.msk [vmem:[%s2314_s24 + $0x60] sm:$0xff] %vm1366_vm0, %v1346_v29 }
 0x2c9   : > { %v1321_v30 = vpop.xlane.xlu1 %1320 }
 0x2ca   : > { %v1361_v32 = vadd.f32 %v2305_v35, %v1321_v30 }
 0x2cc   : > { %1394 = vst.msk [vmem:[%s2314_s24 + $0xd8] sm:$0xff] %vm1366_vm0, %v1361_v32 }
 0x2d4   : > { %v1293_v33 = vpop.xlane.xlu2 %1292 }
 0x2d5   : > { %v1347_v34 = vadd.f32 %v2305_v35, %v1293_v33 }
 0x2d7   : > { %1380 = vst.msk [vmem:[%s2314_s24 + $0x68] sm:$0xff] %vm1366_vm0, %v1347_v34 }
 0x2dc   : > { %v1323_v12 = vpop.xlane.xlu2 %1322 }
 0x2dd   : > { %v1362_v36 = vadd.f32 %v2305_v35, %v1323_v12 }
 0x2df   : > { %1395 = vst.msk [vmem:[%s2314_s24 + $0xe0] sm:$0xff] %vm1366_vm0, %v1362_v36 }
 0x2e3   : > { %v1295_v37 = vpop.xlane.xlu0 %1294 }
 0x2e4   : > { %v1348_v38 = vadd.f32 %v2305_v35, %v1295_v37 }
 0x2e6   : > { %1381 = vst.msk [vmem:[%s2314_s24 + $0x70] sm:$0xff] %vm1366_vm0, %v1348_v38 }
 0x2e7   : > { %v1329_v39 = vpop.xlane.xlu2 %1328 }
 0x2e8   : > { %v1365_v40 = vadd.f32 %v2305_v35, %v1329_v39 }
 0x2ea   : > { %1398 = vst.msk [vmem:[%s2314_s24 + $0xf8] sm:$0xff] %vm1366_vm0, %v1365_v40 }
 0x2eb   : > { %v1325_v19 = vpop.xlane.xlu0 %1324  ;;  %v1297_v20 = vpop.xlane.xlu1 %1296 }
 0x2ec   : > { %v1363_v2 = vadd.f32 %v2305_v35, %v1325_v19  ;;  %v1349_v41 = vadd.f32 %v2305_v35, %v1297_v20 }
 0x2ee   : > { %1396 = vst.msk [vmem:[%s2314_s24 + $0xe8] sm:$0xff] %vm1366_vm0, %v1363_v2 }
 0x2ef   : > { %1382 = vst.msk [vmem:[%s2314_s24 + $0x78] sm:$0xff] %vm1366_vm0, %v1349_v41 }
 0x2f3   : > { %v1327_v42 = vpop.xlane.xlu1 %1326 }
 0x2f4   : > { %v1364_v43 = vadd.f32 %v2305_v35, %v1327_v42 }
 0x2f6   : > { %1397 = vst.msk [vmem:[%s2314_s24 + $0xf0] sm:$0xff] %vm1366_vm0, %v1364_v43 }
 0x2f7 PF: > { %s21_s11 = sadd.s32 1, %s1767_s11  }
 0x2f8   : > { %p18_p4 = scmp.ge.s32.totalorder %s21_s11, 6  }
 0x2fa   :  { %20 = sbr.rel (!%p18_p4) target bundleno = 3 (0x3), region = 88 }

</bundles_post_ra>
